<compile_context>
chip_gen: v7x
topology: tpu7x:2x2x1
jax: 0.10.0
libtpu: 0.0.40
codegen_flags: <defaults>
</compile_context>

<pallas_src>
import functools

import jax
import jax.numpy as jnp
from jax import lax
from jax.experimental import pallas as pl
from jax.experimental.pallas import tpu as pltpu

EPS_LN = 1e-12        # nn.LayerNorm(size, eps=1e-12) in the encoder layer
EPS_CONV_LN = 1e-5    # LayerNorm inside the conv module (torch default)
MATMUL_DTYPE = jnp.bfloat16   # MXU dtype (f32 accumulation in-kernel)
KEY_TILE = 256                # flash-attention key block (>=256 keeps the v6e/v7x 256x256 MXU busy)


# ----------------------------------------------------------------------------- helpers
def _ln(x, gamma, beta, eps):
    mu = jnp.mean(x, axis=-1, keepdims=True)
    var = jnp.mean(jnp.square(x - mu), axis=-1, keepdims=True)
    return (x - mu) * lax.rsqrt(var + eps) * gamma + beta


def _mm(a, w_ref):
    """MXU matmul: cast activation to the (bf16) weight dtype, accumulate in f32."""
    w = w_ref[...]
    return jnp.dot(a.astype(w.dtype), w, preferred_element_type=jnp.float32)


def _bcast_spec(shape):
    """Broadcast (grid-invariant) BlockSpec for a weight tensor."""
    # TODO(synk): single-buffer these grid-invariant windows (pl.Buffered(1)) once pipeline_mode
    # is reliably supported on the TPU pallas_call path; halves weight VMEM on v7x.
    return pl.BlockSpec(shape, lambda *_: (0,) * len(shape))


def _vmem_limit_bytes():
    """Per-generation VMEM budget: ~56 MiB on v7x (64 MiB physical), up to 100 MiB on v5e/v6e."""
    try:
        cap = int(pltpu.get_tpu_info().vmem_capacity_bytes)
    except Exception:
        cap = 64 * 1024 * 1024
    return max(min(cap - 8 * 1024 * 1024, 100 * 1024 * 1024), 32 * 1024 * 1024)


# ----------------------------------------------------------------------------- fused kernel
def conformer_kernel(
    lens_ref,                                     # SMEM (B,2) int32: [:,0]=attn len, [:,1]=conv len
    x_ref,                                        # (1,T,D) activations
    ffm_g, ffm_b, ffm_w1, ffm_b1, ffm_w2, ffm_b2,                       # macaron FFN
    mha_g, mha_b, wqkv, bqkv, wo, bo,                                   # self-attention
    cv_g, cv_b, cv_w1, cv_b1, cv_dw, cv_db, cv_ng, cv_nb, cv_w2, cv_b2,  # conv module
    ff_g, ff_b, ff_w1, ff_b1, ff_w2, ff_b2,                             # FFN
    fin_g, fin_b,                                                       # final LayerNorm
    o_ref, cache_ref,                             # outputs: (1,T,D) f32, (1,2,T,D) bf16 [K|V]
    *, num_heads, kernel_size):
    b = pl.program_id(0)
    x = x_ref[0].astype(jnp.float32)              # (T, D)
    T, D = x.shape
    H = num_heads
    dk = D // H
    K = kernel_size
    pad = (K - 1) // 2
    mt = MATMUL_DTYPE

    att_len = lens_ref[b, 0]                      # valid keys for attention
    conv_len = lens_ref[b, 1]                     # valid rows for the conv module
    t_iota = lax.broadcasted_iota(jnp.int32, (T, D), 0)   # hoisted time index

    # -------- macaron FFN:  x = x + 0.5 * W2 silu(W1 ln(x))
    xn = _ln(x, ffm_g[...], ffm_b[...], EPS_LN)
    h = _mm(xn, ffm_w1) + ffm_b1[...]
    h = h * jax.nn.sigmoid(h)                     # SiLU
    x = x + 0.5 * (_mm(h, ffm_w2) + ffm_b2[...])

    # -------- self-attention (vanilla MHA, key-masked flash-style softmax)
    xn = _ln(x, mha_g[...], mha_b[...], EPS_LN)
    qkv = _mm(xn, wqkv) + bqkv[...]               # one fused (T,D)@(D,3D) projection
    q = (qkv[:, :D] * (1.0 / (dk ** 0.5))).astype(mt)     # fold 1/sqrt(dk) into q, cast once
    k = qkv[:, D:2 * D].astype(mt)
    v = qkv[:, 2 * D:].astype(mt)
    cache_ref[0, 0] = k                           # dense (T,D) stores, no lane-offset slicing
    cache_ref[0, 1] = v

    # head packing: bf16 slices halve the copy bytes vs f32
    # TODO(synk): switch to reshape(T,H,dk)+transpose(1,0,2) once Mosaic supports that permutation.
    q3 = jnp.stack([q[:, h_ * dk:(h_ + 1) * dk] for h_ in range(H)], axis=0)  # (H,T,dk) bf16
    k3 = jnp.stack([k[:, h_ * dk:(h_ + 1) * dk] for h_ in range(H)], axis=0)
    v3 = jnp.stack([v[:, h_ * dk:(h_ + 1) * dk] for h_ in range(H)], axis=0)

    # online softmax over static key tiles: no (H,T,T) temporaries, footprint O(H*T*KEY_TILE)
    tk = min(KEY_TILE, T)
    m_i = jnp.full((H, T, 1), -1e30, jnp.float32)
    l_i = jnp.zeros((H, T, 1), jnp.float32)
    acc = jnp.zeros((H, T, dk), jnp.float32)
    for ks in range(0, T, tk):                    # static key-tile loop (unrolled)
        ke = min(T, ks + tk)
        cur = ke - ks
        kb = k3[:, ks:ke, :]
        vb = v3[:, ks:ke, :]
        s = jnp.einsum("hqd,hkd->hqk", q3, kb, preferred_element_type=jnp.float32)   # (H,T,cur)
        kv_ok = (ks + lax.broadcasted_iota(jnp.int32, (1, 1, cur), 2)) < att_len
        s = jnp.where(kv_ok, s, -1e30)
        m_new = jnp.maximum(m_i, jnp.max(s, axis=-1, keepdims=True))
        alpha = jnp.exp(m_i - m_new)
        p = jnp.exp(s - m_new)
        p = jnp.where(kv_ok, p, 0.0)
        l_i = alpha * l_i + jnp.sum(p, axis=-1, keepdims=True)
        acc = alpha * acc + jnp.einsum("hqk,hkd->hqd", p.astype(mt), vb,
                                       preferred_element_type=jnp.float32)
        m_i = m_new
    attn = acc * pl.reciprocal(l_i + 1e-30, approx=True)                 # EUP divide
    attn = jnp.concatenate([attn[h_] for h_ in range(H)], axis=-1)       # (T, D)
    x = x + _mm(attn, wo) + bo[...]
    # TODO(synk): a grid-level query-tile axis would cap VMEM independent of T, but full fusion
    # (conv halo + residual stream) prevents splitting T across grid steps in a single kernel.

    # -------- convolution module
    xn = _ln(x, cv_g[...], cv_b[...], EPS_LN)
    xm = jnp.where(t_iota < conv_len, xn, 0.0)    # masked_fill(~mask_pad, 0)
    hglu = _mm(xm, cv_w1) + cv_b1[...]            # pointwise_conv1: (T, 2D)
    hg = hglu[:, :D] * jax.nn.sigmoid(hglu[:, D:])            # GLU over channels
    # depthwise conv along time: pltpu.roll per tap (XLU) + iota edge masks, accumulated on the VPU
    dw = cv_dw[...]                               # (K, 1, D)
    acc_c = jnp.zeros((T, D), jnp.float32) + cv_db[...]
    for j in range(K):                            # static taps
        off = j - pad                             # want acc[t] += hg[t + off] * dw[j]
        if off == 0:
            tap = hg
        else:
            rolled = pltpu.roll(hg, (-off) % T, 0)            # rolled[t] = hg[(t + off) mod T]
            ok = (t_iota >= -off) if off < 0 else (t_iota < T - off)
            tap = jnp.where(ok, rolled, 0.0)
        acc_c = acc_c + tap * dw[j]
    hn = _ln(acc_c, cv_ng[...], cv_nb[...], EPS_CONV_LN)      # conv-module LayerNorm
    hs = hn * jax.nn.sigmoid(hn)                              # Swish
    y = _mm(hs, cv_w2) + cv_b2[...]               # pointwise_conv2
    x = x + jnp.where(t_iota < conv_len, y, 0.0)

    # -------- second FFN + fused final LayerNorm
    xn = _ln(x, ff_g[...], ff_b[...], EPS_LN)
    h = _mm(xn, ff_w1) + ff_b1[...]
    h = h * jax.nn.sigmoid(h)
    x = x + 0.5 * (_mm(h, ff_w2) + ff_b2[...])
    o_ref[0] = _ln(x, fin_g[...], fin_b[...], EPS_LN).astype(o_ref.dtype)


# ----------------------------------------------------------------------------- wrapper
def conformer_layer_forward(x, mask, pos_emb, mask_pad, params, *, num_heads, kernel_size):
    """Pallas implementation of ConformerEncoderLayer.forward (normalize_before=True, eval mode).

    x: (B,T,D) f32, mask: (B,1,T) bool, pos_emb unused (vanilla MHA), mask_pad: (B,1,T) bool.
    Returns (x, mask, new_att_cache, new_cnn_cache).
    """
    del pos_emb  # TODO(synk): RelPositionMultiHeadedAttention (pos_emb path) not implemented; vanilla MHA ignores it.
    B, T, D = x.shape
    assert D % num_heads == 0
    dk = D // num_heads
    K = kernel_size
    F = params["ff"][0].shape[1]
    mt = MATMUL_DTYPE

    # TODO(synk): mask / mask_pad are assumed to be prefix (length) masks (WeNet make_pad_mask);
    # both reach the kernel as scalar lengths in SMEM — no (B,1,T) mask DMA stream at all.
    att_len = jnp.sum(mask.astype(jnp.int32), axis=(1, 2))
    conv_len = jnp.sum(mask_pad.astype(jnp.int32), axis=(1, 2))
    lens = jnp.stack([att_len, conv_len], axis=1).astype(jnp.int32)     # (B, 2)

    g_ffm, b_ffm = params["norm_ff_macaron"]
    w1m, b1m, w2m, b2m = params["ff_macaron"]
    g_mha, b_mha = params["norm_mha"]
    wq, bq, wk, bk, wv, bv, wo, bo = params["attn"]
    g_cv, b_cv = params["norm_conv"]
    w1a, b1a, w1b, b1b, dww, dwb, cng, cnb, pw2w, pw2b = params["conv"]
    g_ff, b_ff = params["norm_ff"]
    w1f, b1f, w2f, b2f = params["ff"]
    g_fin, b_fin = params["norm_final"]

    # fuse projections and pre-cast MXU weights to bf16 (halves weight DMA; f32 accumulation in-kernel)
    wqkv = jnp.concatenate([wq, wk, wv], axis=1).astype(mt)             # (D, 3D)
    bqkv = jnp.concatenate([bq, bk, bv], axis=1)
    w1c = jnp.concatenate([w1a, w1b], axis=1).astype(mt)                # (D, 2D), GLU halves
    b1c = jnp.concatenate([b1a, b1b], axis=1)

    weights = [
        g_ffm, b_ffm, w1m.astype(mt), b1m, w2m.astype(mt), b2m,
        g_mha, b_mha, wqkv, bqkv, wo.astype(mt), bo,
        g_cv, b_cv, w1c, b1c, dww, dwb, cng, cnb, pw2w.astype(mt), pw2b,
        g_ff, b_ff, w1f.astype(mt), b1f, w2f.astype(mt), b2f,
        g_fin, b_fin,
    ]
    # TODO(synk): for v5e (memory-bound) also cast x / o to bf16 at this boundary to halve the
    # activation HBM traffic; kept f32 here for closer parity with the f32 PyTorch module.

    # advisory cost estimate for the XLA scheduler
    flops = B * (8 * T * D * F + 14 * T * D * D + 4 * T * T * D + 2 * K * T * D)
    transc = B * (2 * T * F + 2 * T * D + num_heads * T * T)
    bytes_accessed = 4 * (2 * B * T * D) + 2 * (B * 2 * T * D) + 8 * B
    for w in weights:
        bytes_accessed += int(w.size) * w.dtype.itemsize

    in_specs = [pl.BlockSpec((1, T, D), lambda b, *_: (b, 0, 0))]
    in_specs += [_bcast_spec(w.shape) for w in weights]
    out_specs = (pl.BlockSpec((1, T, D), lambda b, *_: (b, 0, 0)),
                 pl.BlockSpec((1, 2, T, D), lambda b, *_: (b, 0, 0, 0)))

    out, cache = pl.pallas_call(
        functools.partial(conformer_kernel, num_heads=num_heads, kernel_size=kernel_size),
        out_shape=(jax.ShapeDtypeStruct((B, T, D), jnp.float32),
                   jax.ShapeDtypeStruct((B, 2, T, D), jnp.bfloat16)),
        grid_spec=pltpu.PrefetchScalarGridSpec(
            num_scalar_prefetch=1, grid=(B,),
            in_specs=in_specs, out_specs=out_specs),
        compiler_params=pltpu.CompilerParams(
            dimension_semantics=("parallel",),
            vmem_limit_bytes=_vmem_limit_bytes()),
        cost_estimate=pl.CostEstimate(flops=int(flops), transcendentals=int(transc),
                                      bytes_accessed=int(bytes_accessed)),
    )(lens, x, *weights)

    # unpack the bf16 (B,2,T,D) [K|V] slab into the WeNet cache layout (B,H,T,2*dk)
    kc = cache[:, 0].astype(x.dtype).reshape(B, T, num_heads, dk).transpose(0, 2, 1, 3)
    vc = cache[:, 1].astype(x.dtype).reshape(B, T, num_heads, dk).transpose(0, 2, 1, 3)
    new_att_cache = jnp.concatenate([kc, vc], axis=-1)
    new_cnn_cache = jnp.zeros((0, 0, 0), dtype=x.dtype)                 # non-streaming conv: empty cache
    return out, mask, new_att_cache, new_cnn_cache


# ----------------------------------------------------------------------------- pure-JAX (f32) reference
def reference_forward(x, mask, mask_pad, params, *, num_heads, kernel_size):
    B, T, D = x.shape
    dk = D // num_heads
    maskf = mask.astype(jnp.float32)
    mpadf = jnp.transpose(mask_pad.astype(jnp.float32), (0, 2, 1))

    def ln(v, g, b, eps):
        mu = jnp.mean(v, -1, keepdims=True)
        var = jnp.mean(jnp.square(v - mu), -1, keepdims=True)
        return (v - mu) / jnp.sqrt(var + eps) * g + b

    def ffn(v, p):
        w1, b1, w2, b2 = p
        h = v @ w1 + b1
        h = h * jax.nn.sigmoid(h)
        return h @ w2 + b2

    x = x + 0.5 * ffn(ln(x, *params["norm_ff_macaron"], EPS_LN), params["ff_macaron"])

    xn = ln(x, *params["norm_mha"], EPS_LN)
    wq, bq, wk, bk, wv, bv, wo, bo = params["attn"]
    q = (xn @ wq + bq).reshape(B, T, num_heads, dk).transpose(0, 2, 1, 3)
    k = (xn @ wk + bk).reshape(B, T, num_heads, dk).transpose(0, 2, 1, 3)
    v = (xn @ wv + bv).reshape(B, T, num_heads, dk).transpose(0, 2, 1, 3)
    scores = jnp.einsum("bhqd,bhkd->bhqk", q, k) / (dk ** 0.5)
    valid = maskf[:, :, None, :] > 0
    scores = jnp.where(valid, scores, -1e30)
    p = jax.nn.softmax(scores, -1)
    p = jnp.where(valid, p, 0.0)
    o = jnp.einsum("bhqk,bhkd->bhqd", p, v).transpose(0, 2, 1, 3).reshape(B, T, D)
    x = x + o @ wo + bo
    att_cache = jnp.concatenate([k, v], axis=-1)

    xn = ln(x, *params["norm_conv"], EPS_LN)
    w1a, b1a, w1b, b1b, dww, dwb, cng, cnb, pw2w, pw2b = params["conv"]
    xm = xn * mpadf
    hg = (xm @ w1a + b1a) * jax.nn.sigmoid(xm @ w1b + b1b)
    pad = (kernel_size - 1) // 2
    hg_p = jnp.pad(hg, ((0, 0), (pad, pad), (0, 0)))
    acc = jnp.zeros((B, T, D), jnp.float32) + dwb
    for j in range(kernel_size):
        acc = acc + hg_p[:, j:j + T, :] * dww[j]
    hn = ln(acc, cng, cnb, EPS_CONV_LN)
    hs = hn * jax.nn.sigmoid(hn)
    x = x + (hs @ pw2w + pw2b) * mpadf

    x = x + 0.5 * ffn(ln(x, *params["norm_ff"], EPS_LN), params["ff"])
    x = ln(x, *params["norm_final"], EPS_LN)
    return x, att_cache


# ----------------------------------------------------------------------------- params / main
def init_params(key, D, F, K):
    keys = iter(jax.random.split(key, 48))

    def w(shape, s=0.08):
        return (s * jax.random.normal(next(keys), shape)).astype(jnp.float32)

    def ln_pair():
        return (1.0 + w((1, D), 0.05), w((1, D), 0.05))

    params = {}
    params["norm_ff_macaron"] = ln_pair()
    params["ff_macaron"] = (w((D, F)), w((1, F)), w((F, D)), w((1, D)))
    params["norm_mha"] = ln_pair()
    params["attn"] = (w((D, D)), w((1, D)), w((D, D)), w((1, D)),
                      w((D, D)), w((1, D)), w((D, D)), w((1, D)))
    params["norm_conv"] = ln_pair()
    params["conv"] = (w((D, D)), w((1, D)),        # pointwise_conv1, first half (GLU value)
                      w((D, D)), w((1, D)),        # pointwise_conv1, second half (GLU gate)
                      w((K, 1, D)), w((1, D)),     # depthwise conv weight (K taps) + bias
                      1.0 + w((1, D), 0.05), w((1, D), 0.05),   # conv-module LayerNorm
                      w((D, D)), w((1, D)))        # pointwise_conv2
    params["norm_ff"] = ln_pair()
    params["ff"] = (w((D, F)), w((1, F)), w((F, D)), w((1, D)))
    params["norm_final"] = ln_pair()
    return params


if __name__ == "__main__":
    B, T, D, H, F, K = 2, 8, 32, 4, 64, 3

    root = jax.random.PRNGKey(0)
    k_par, k_x, k_pos = jax.random.split(root, 3)
    params = init_params(k_par, D, F, K)
    x = jax.random.normal(k_x, (B, T, D), dtype=jnp.float32)
    pos_emb = jax.random.normal(k_pos, (1, T, D), dtype=jnp.float32)    # unused by vanilla MHA

    lengths = jnp.array([T, T - 2])
    mask = (jnp.arange(T)[None, None, :] < lengths[:, None, None])      # (B,1,T) bool
    mask_pad = mask

    out, mask_out, att_cache, cnn_cache = conformer_layer_forward(
        x, mask, pos_emb, mask_pad, params, num_heads=H, kernel_size=K)
    out = jax.block_until_ready(out)
    att_cache = jax.block_until_ready(att_cache)

    ref_out, ref_cache = reference_forward(x, mask, mask_pad, params,
                                           num_heads=H, kernel_size=K)
    assert out.shape == (B, T, D) and att_cache.shape == (B, H, T, 2 * (D // H))
    assert cnn_cache.shape == (0, 0, 0)
    # in-kernel matmuls run in bf16 (f32 accumulation) and the KV cache is stored in bf16, so
    # compare against the f32 reference with a bf16-level tolerance
    assert jnp.allclose(out, ref_out, atol=3e-2, rtol=3e-2), \
        float(jnp.max(jnp.abs(out - ref_out)))
    assert jnp.allclose(att_cache, ref_cache, atol=3e-2, rtol=3e-2), \
        float(jnp.max(jnp.abs(att_cache - ref_cache)))
    print("KERNEL_OK")
</pallas_src>

<mosaic_0001>
module attributes {stable_mosaic.version = 11 : i64} {
  func.func @conformer_kernel(%arg0: i32, %arg1: memref<2x2xi32, #tpu.memory_space<smem>>, %arg2: memref<1x8x32xf32, #tpu.memory_space<vmem>>, %arg3: memref<1x32xf32, #tpu.memory_space<vmem>>, %arg4: memref<1x32xf32, #tpu.memory_space<vmem>>, %arg5: memref<32x64xbf16, #tpu.memory_space<vmem>>, %arg6: memref<1x64xf32, #tpu.memory_space<vmem>>, %arg7: memref<64x32xbf16, #tpu.memory_space<vmem>>, %arg8: memref<1x32xf32, #tpu.memory_space<vmem>>, %arg9: memref<1x32xf32, #tpu.memory_space<vmem>>, %arg10: memref<1x32xf32, #tpu.memory_space<vmem>>, %arg11: memref<32x96xbf16, #tpu.memory_space<vmem>>, %arg12: memref<1x96xf32, #tpu.memory_space<vmem>>, %arg13: memref<32x32xbf16, #tpu.memory_space<vmem>>, %arg14: memref<1x32xf32, #tpu.memory_space<vmem>>, %arg15: memref<1x32xf32, #tpu.memory_space<vmem>>, %arg16: memref<1x32xf32, #tpu.memory_space<vmem>>, %arg17: memref<32x64xbf16, #tpu.memory_space<vmem>>, %arg18: memref<1x64xf32, #tpu.memory_space<vmem>>, %arg19: memref<3x1x32xf32, #tpu.memory_space<vmem>>, %arg20: memref<1x32xf32, #tpu.memory_space<vmem>>, %arg21: memref<1x32xf32, #tpu.memory_space<vmem>>, %arg22: memref<1x32xf32, #tpu.memory_space<vmem>>, %arg23: memref<32x32xbf16, #tpu.memory_space<vmem>>, %arg24: memref<1x32xf32, #tpu.memory_space<vmem>>, %arg25: memref<1x32xf32, #tpu.memory_space<vmem>>, %arg26: memref<1x32xf32, #tpu.memory_space<vmem>>, %arg27: memref<32x64xbf16, #tpu.memory_space<vmem>>, %arg28: memref<1x64xf32, #tpu.memory_space<vmem>>, %arg29: memref<64x32xbf16, #tpu.memory_space<vmem>>, %arg30: memref<1x32xf32, #tpu.memory_space<vmem>>, %arg31: memref<1x32xf32, #tpu.memory_space<vmem>>, %arg32: memref<1x32xf32, #tpu.memory_space<vmem>>, %arg33: memref<1x8x32xf32, #tpu.memory_space<vmem>>, %arg34: memref<1x2x8x32xbf16, #tpu.memory_space<vmem>>) attributes {dimension_semantics = [#tpu.dimension_semantics<parallel>], iteration_bounds = array<i64: 2>, scalar_prefetch = 1 : i64, scratch_operands = 0 : i64, tpu.core_type = #tpu.core_type<tc>, window_params = [{transform_indices = @transform_0, window_bounds = array<i64: 1, 8, 32>}, {pipeline_mode = #tpu.pipeline_mode<synchronous>, transform_indices = @transform_1, window_bounds = array<i64: 1, 32>}, {pipeline_mode = #tpu.pipeline_mode<synchronous>, transform_indices = @transform_2, window_bounds = array<i64: 1, 32>}, {pipeline_mode = #tpu.pipeline_mode<synchronous>, transform_indices = @transform_3, window_bounds = array<i64: 32, 64>}, {pipeline_mode = #tpu.pipeline_mode<synchronous>, transform_indices = @transform_4, window_bounds = array<i64: 1, 64>}, {pipeline_mode = #tpu.pipeline_mode<synchronous>, transform_indices = @transform_5, window_bounds = array<i64: 64, 32>}, {pipeline_mode = #tpu.pipeline_mode<synchronous>, transform_indices = @transform_6, window_bounds = array<i64: 1, 32>}, {pipeline_mode = #tpu.pipeline_mode<synchronous>, transform_indices = @transform_7, window_bounds = array<i64: 1, 32>}, {pipeline_mode = #tpu.pipeline_mode<synchronous>, transform_indices = @transform_8, window_bounds = array<i64: 1, 32>}, {pipeline_mode = #tpu.pipeline_mode<synchronous>, transform_indices = @transform_9, window_bounds = array<i64: 32, 96>}, {pipeline_mode = #tpu.pipeline_mode<synchronous>, transform_indices = @transform_10, window_bounds = array<i64: 1, 96>}, {pipeline_mode = #tpu.pipeline_mode<synchronous>, transform_indices = @transform_11, window_bounds = array<i64: 32, 32>}, {pipeline_mode = #tpu.pipeline_mode<synchronous>, transform_indices = @transform_12, window_bounds = array<i64: 1, 32>}, {pipeline_mode = #tpu.pipeline_mode<synchronous>, transform_indices = @transform_13, window_bounds = array<i64: 1, 32>}, {pipeline_mode = #tpu.pipeline_mode<synchronous>, transform_indices = @transform_14, window_bounds = array<i64: 1, 32>}, {pipeline_mode = #tpu.pipeline_mode<synchronous>, transform_indices = @transform_15, window_bounds = array<i64: 32, 64>}, {pipeline_mode = #tpu.pipeline_mode<synchronous>, transform_indices = @transform_16, window_bounds = array<i64: 1, 64>}, {pipeline_mode = #tpu.pipeline_mode<synchronous>, transform_indices = @transform_17, window_bounds = array<i64: 3, 1, 32>}, {pipeline_mode = #tpu.pipeline_mode<synchronous>, transform_indices = @transform_18, window_bounds = array<i64: 1, 32>}, {pipeline_mode = #tpu.pipeline_mode<synchronous>, transform_indices = @transform_19, window_bounds = array<i64: 1, 32>}, {pipeline_mode = #tpu.pipeline_mode<synchronous>, transform_indices = @transform_20, window_bounds = array<i64: 1, 32>}, {pipeline_mode = #tpu.pipeline_mode<synchronous>, transform_indices = @transform_21, window_bounds = array<i64: 32, 32>}, {pipeline_mode = #tpu.pipeline_mode<synchronous>, transform_indices = @transform_22, window_bounds = array<i64: 1, 32>}, {pipeline_mode = #tpu.pipeline_mode<synchronous>, transform_indices = @transform_23, window_bounds = array<i64: 1, 32>}, {pipeline_mode = #tpu.pipeline_mode<synchronous>, transform_indices = @transform_24, window_bounds = array<i64: 1, 32>}, {pipeline_mode = #tpu.pipeline_mode<synchronous>, transform_indices = @transform_25, window_bounds = array<i64: 32, 64>}, {pipeline_mode = #tpu.pipeline_mode<synchronous>, transform_indices = @transform_26, window_bounds = array<i64: 1, 64>}, {pipeline_mode = #tpu.pipeline_mode<synchronous>, transform_indices = @transform_27, window_bounds = array<i64: 64, 32>}, {pipeline_mode = #tpu.pipeline_mode<synchronous>, transform_indices = @transform_28, window_bounds = array<i64: 1, 32>}, {pipeline_mode = #tpu.pipeline_mode<synchronous>, transform_indices = @transform_29, window_bounds = array<i64: 1, 32>}, {pipeline_mode = #tpu.pipeline_mode<synchronous>, transform_indices = @transform_30, window_bounds = array<i64: 1, 32>}, {transform_indices = @transform_31, window_bounds = array<i64: 1, 8, 32>}, {transform_indices = @transform_32, window_bounds = array<i64: 1, 2, 8, 32>}]} {
    %c0 = arith.constant 0 : index
    %c0_0 = arith.constant 0 : index
    %c0_1 = arith.constant 0 : index
    %0 = vector.load %arg2[%c0, %c0_0, %c0_1] : memref<1x8x32xf32, #tpu.memory_space<vmem>>, vector<1x8x32xf32>
    %1 = vector.shape_cast %0 : vector<1x8x32xf32> to vector<8x32xf32>
    %2 = arith.index_cast %arg0 : i32 to index
    %c0_2 = arith.constant 0 : index
    %3 = memref.load %arg1[%2, %c0_2] : memref<2x2xi32, #tpu.memory_space<smem>>
    %4 = arith.index_cast %arg0 : i32 to index
    %c1 = arith.constant 1 : index
    %5 = memref.load %arg1[%4, %c1] : memref<2x2xi32, #tpu.memory_space<smem>>
    %6 = tpu.iota {dimensions = array<i32: 0>} : vector<8x32xi32>
    %c0_3 = arith.constant 0 : index
    %c0_4 = arith.constant 0 : index
    %7 = vector.load %arg3[%c0_3, %c0_4] : memref<1x32xf32, #tpu.memory_space<vmem>>, vector<1x32xf32>
    %c0_5 = arith.constant 0 : index
    %c0_6 = arith.constant 0 : index
    %8 = vector.load %arg4[%c0_5, %c0_6] : memref<1x32xf32, #tpu.memory_space<vmem>>, vector<1x32xf32>
    %cst = arith.constant dense<0.000000e+00> : vector<8xf32>
    %9 = vector.multi_reduction <add>, %1, %cst [1] : vector<8x32xf32> to vector<8xf32>
    %10 = vector.shape_cast %9 : vector<8xf32> to vector<8x1xf32>
    %cst_7 = arith.constant 3.200000e+01 : f32
    %11 = vector.broadcast %cst_7 : f32 to vector<8x1xf32>
    %12 = arith.divf %10, %11 : vector<8x1xf32>
    %13 = vector.broadcast %12 : vector<8x1xf32> to vector<8x32xf32>
    %14 = arith.subf %1, %13 : vector<8x32xf32>
    %15 = arith.mulf %14, %14 : vector<8x32xf32>
    %cst_8 = arith.constant dense<0.000000e+00> : vector<8xf32>
    %16 = vector.multi_reduction <add>, %15, %cst_8 [1] : vector<8x32xf32> to vector<8xf32>
    %17 = vector.shape_cast %16 : vector<8xf32> to vector<8x1xf32>
    %cst_9 = arith.constant 3.200000e+01 : f32
    %18 = vector.broadcast %cst_9 : f32 to vector<8x1xf32>
    %19 = arith.divf %17, %18 : vector<8x1xf32>
    %20 = vector.broadcast %12 : vector<8x1xf32> to vector<8x32xf32>
    %21 = arith.subf %1, %20 : vector<8x32xf32>
    %cst_10 = arith.constant 9.99999996E-13 : f32
    %22 = vector.broadcast %cst_10 : f32 to vector<8x1xf32>
    %23 = arith.addf %19, %22 : vector<8x1xf32>
    %24 = math.rsqrt %23 : vector<8x1xf32>
    %25 = vector.broadcast %24 : vector<8x1xf32> to vector<8x32xf32>
    %26 = arith.mulf %21, %25 : vector<8x32xf32>
    %27 = vector.broadcast %7 : vector<1x32xf32> to vector<8x32xf32>
    %28 = arith.mulf %26, %27 : vector<8x32xf32>
    %29 = vector.broadcast %8 : vector<1x32xf32> to vector<8x32xf32>
    %30 = arith.addf %28, %29 : vector<8x32xf32>
    %c0_11 = arith.constant 0 : index
    %c0_12 = arith.constant 0 : index
    %31 = vector.load %arg5[%c0_11, %c0_12] : memref<32x64xbf16, #tpu.memory_space<vmem>>, vector<32x64xbf16>
    %32 = arith.truncf %30 : vector<8x32xf32> to vector<8x32xbf16>
    %cst_13 = arith.constant dense<0.000000e+00> : vector<8x64xf32>
    %33 = tpu.matmul %32, %31, %cst_13 {dimension_numbers = #tpu.dot_dimension_numbers<[1], [0], [0], [1], [0, 0, 1, 1], [], []>} : vector<8x32xbf16>, vector<32x64xbf16>, vector<8x64xf32> -> vector<8x64xf32>
    %c0_14 = arith.constant 0 : index
    %c0_15 = arith.constant 0 : index
    %34 = vector.load %arg6[%c0_14, %c0_15] : memref<1x64xf32, #tpu.memory_space<vmem>>, vector<1x64xf32>
    %35 = vector.broadcast %34 : vector<1x64xf32> to vector<8x64xf32>
    %36 = arith.addf %33, %35 : vector<8x64xf32>
    %37 = arith.negf %36 : vector<8x64xf32>
    %38 = math.exp %37 : vector<8x64xf32>
    %cst_16 = arith.constant 1.000000e+00 : f32
    %39 = vector.broadcast %cst_16 : f32 to vector<8x64xf32>
    %40 = arith.addf %39, %38 : vector<8x64xf32>
    %41 = arith.divf %39, %40 : vector<8x64xf32>
    %42 = arith.mulf %36, %41 : vector<8x64xf32>
    %c0_17 = arith.constant 0 : index
    %c0_18 = arith.constant 0 : index
    %43 = vector.load %arg7[%c0_17, %c0_18] : memref<64x32xbf16, #tpu.memory_space<vmem>>, vector<64x32xbf16>
    %44 = arith.truncf %42 : vector<8x64xf32> to vector<8x64xbf16>
    %cst_19 = arith.constant dense<0.000000e+00> : vector<8x32xf32>
    %45 = tpu.matmul %44, %43, %cst_19 {dimension_numbers = #tpu.dot_dimension_numbers<[1], [0], [0], [1], [0, 0, 1, 1], [], []>} : vector<8x64xbf16>, vector<64x32xbf16>, vector<8x32xf32> -> vector<8x32xf32>
    %c0_20 = arith.constant 0 : index
    %c0_21 = arith.constant 0 : index
    %46 = vector.load %arg8[%c0_20, %c0_21] : memref<1x32xf32, #tpu.memory_space<vmem>>, vector<1x32xf32>
    %47 = vector.broadcast %46 : vector<1x32xf32> to vector<8x32xf32>
    %48 = arith.addf %45, %47 : vector<8x32xf32>
    %cst_22 = arith.constant 5.000000e-01 : f32
    %49 = vector.broadcast %cst_22 : f32 to vector<8x32xf32>
    %50 = arith.mulf %49, %48 : vector<8x32xf32>
    %51 = arith.addf %1, %50 : vector<8x32xf32>
    %c0_23 = arith.constant 0 : index
    %c0_24 = arith.constant 0 : index
    %52 = vector.load %arg9[%c0_23, %c0_24] : memref<1x32xf32, #tpu.memory_space<vmem>>, vector<1x32xf32>
    %c0_25 = arith.constant 0 : index
    %c0_26 = arith.constant 0 : index
    %53 = vector.load %arg10[%c0_25, %c0_26] : memref<1x32xf32, #tpu.memory_space<vmem>>, vector<1x32xf32>
    %cst_27 = arith.constant dense<0.000000e+00> : vector<8xf32>
    %54 = vector.multi_reduction <add>, %51, %cst_27 [1] : vector<8x32xf32> to vector<8xf32>
    %55 = vector.shape_cast %54 : vector<8xf32> to vector<8x1xf32>
    %cst_28 = arith.constant 3.200000e+01 : f32
    %56 = vector.broadcast %cst_28 : f32 to vector<8x1xf32>
    %57 = arith.divf %55, %56 : vector<8x1xf32>
    %58 = vector.broadcast %57 : vector<8x1xf32> to vector<8x32xf32>
    %59 = arith.subf %51, %58 : vector<8x32xf32>
    %60 = arith.mulf %59, %59 : vector<8x32xf32>
    %cst_29 = arith.constant dense<0.000000e+00> : vector<8xf32>
    %61 = vector.multi_reduction <add>, %60, %cst_29 [1] : vector<8x32xf32> to vector<8xf32>
    %62 = vector.shape_cast %61 : vector<8xf32> to vector<8x1xf32>
    %cst_30 = arith.constant 3.200000e+01 : f32
    %63 = vector.broadcast %cst_30 : f32 to vector<8x1xf32>
    %64 = arith.divf %62, %63 : vector<8x1xf32>
    %65 = vector.broadcast %57 : vector<8x1xf32> to vector<8x32xf32>
    %66 = arith.subf %51, %65 : vector<8x32xf32>
    %cst_31 = arith.constant 9.99999996E-13 : f32
    %67 = vector.broadcast %cst_31 : f32 to vector<8x1xf32>
    %68 = arith.addf %64, %67 : vector<8x1xf32>
    %69 = math.rsqrt %68 : vector<8x1xf32>
    %70 = vector.broadcast %69 : vector<8x1xf32> to vector<8x32xf32>
    %71 = arith.mulf %66, %70 : vector<8x32xf32>
    %72 = vector.broadcast %52 : vector<1x32xf32> to vector<8x32xf32>
    %73 = arith.mulf %71, %72 : vector<8x32xf32>
    %74 = vector.broadcast %53 : vector<1x32xf32> to vector<8x32xf32>
    %75 = arith.addf %73, %74 : vector<8x32xf32>
    %c0_32 = arith.constant 0 : index
    %c0_33 = arith.constant 0 : index
    %76 = vector.load %arg11[%c0_32, %c0_33] : memref<32x96xbf16, #tpu.memory_space<vmem>>, vector<32x96xbf16>
    %77 = arith.truncf %75 : vector<8x32xf32> to vector<8x32xbf16>
    %cst_34 = arith.constant dense<0.000000e+00> : vector<8x96xf32>
    %78 = tpu.matmul %77, %76, %cst_34 {dimension_numbers = #tpu.dot_dimension_numbers<[1], [0], [0], [1], [0, 0, 1, 1], [], []>} : vector<8x32xbf16>, vector<32x96xbf16>, vector<8x96xf32> -> vector<8x96xf32>
    %c0_35 = arith.constant 0 : index
    %c0_36 = arith.constant 0 : index
    %79 = vector.load %arg12[%c0_35, %c0_36] : memref<1x96xf32, #tpu.memory_space<vmem>>, vector<1x96xf32>
    %80 = vector.broadcast %79 : vector<1x96xf32> to vector<8x96xf32>
    %81 = arith.addf %78, %80 : vector<8x96xf32>
    %82 = vector.extract_strided_slice %81 {offsets = [0, 0], sizes = [8, 32], strides = [1, 1]} : vector<8x96xf32> to vector<8x32xf32>
    %cst_37 = arith.constant 0.353553385 : f32
    %83 = vector.broadcast %cst_37 : f32 to vector<8x32xf32>
    %84 = arith.mulf %82, %83 : vector<8x32xf32>
    %85 = arith.truncf %84 : vector<8x32xf32> to vector<8x32xbf16>
    %86 = vector.extract_strided_slice %81 {offsets = [0, 32], sizes = [8, 32], strides = [1, 1]} : vector<8x96xf32> to vector<8x32xf32>
    %87 = arith.truncf %86 : vector<8x32xf32> to vector<8x32xbf16>
    %88 = vector.extract_strided_slice %81 {offsets = [0, 64], sizes = [8, 32], strides = [1, 1]} : vector<8x96xf32> to vector<8x32xf32>
    %89 = arith.truncf %88 : vector<8x32xf32> to vector<8x32xbf16>
    %c0_38 = arith.constant 0 : index
    %c0_39 = arith.constant 0 : index
    %c0_40 = arith.constant 0 : index
    %c0_41 = arith.constant 0 : index
    %90 = vector.load %arg34[%c0_38, %c0_39, %c0_40, %c0_41] : memref<1x2x8x32xbf16, #tpu.memory_space<vmem>>, vector<1x1x8x32xbf16>
    %91 = vector.shape_cast %90 : vector<1x1x8x32xbf16> to vector<8x32xbf16>
    %92 = vector.shape_cast %87 : vector<8x32xbf16> to vector<1x1x8x32xbf16>
    tpu.vector_store %arg34[%c0_38, %c0_39, %c0_40, %c0_41], %92 {strides = array<i32>} : memref<1x2x8x32xbf16, #tpu.memory_space<vmem>>, vector<1x1x8x32xbf16>,
    %c0_42 = arith.constant 0 : index
    %c1_43 = arith.constant 1 : index
    %c0_44 = arith.constant 0 : index
    %c0_45 = arith.constant 0 : index
    %93 = vector.load %arg34[%c0_42, %c1_43, %c0_44, %c0_45] : memref<1x2x8x32xbf16, #tpu.memory_space<vmem>>, vector<1x1x8x32xbf16>
    %94 = vector.shape_cast %93 : vector<1x1x8x32xbf16> to vector<8x32xbf16>
    %95 = vector.shape_cast %89 : vector<8x32xbf16> to vector<1x1x8x32xbf16>
    tpu.vector_store %arg34[%c0_42, %c1_43, %c0_44, %c0_45], %95 {strides = array<i32>} : memref<1x2x8x32xbf16, #tpu.memory_space<vmem>>, vector<1x1x8x32xbf16>,
    %96 = vector.extract_strided_slice %85 {offsets = [0, 0], sizes = [8, 8], strides = [1, 1]} : vector<8x32xbf16> to vector<8x8xbf16>
    %97 = vector.extract_strided_slice %85 {offsets = [0, 8], sizes = [8, 8], strides = [1, 1]} : vector<8x32xbf16> to vector<8x8xbf16>
    %98 = vector.extract_strided_slice %85 {offsets = [0, 16], sizes = [8, 8], strides = [1, 1]} : vector<8x32xbf16> to vector<8x8xbf16>
    %99 = vector.extract_strided_slice %85 {offsets = [0, 24], sizes = [8, 8], strides = [1, 1]} : vector<8x32xbf16> to vector<8x8xbf16>
    %100 = vector.shape_cast %96 : vector<8x8xbf16> to vector<1x8x8xbf16>
    %101 = vector.shape_cast %97 : vector<8x8xbf16> to vector<1x8x8xbf16>
    %102 = vector.shape_cast %98 : vector<8x8xbf16> to vector<1x8x8xbf16>
    %103 = vector.shape_cast %99 : vector<8x8xbf16> to vector<1x8x8xbf16>
    %104 = tpu.concatenate %100, %101, %102, %103 in 0 : vector<1x8x8xbf16>, vector<1x8x8xbf16>, vector<1x8x8xbf16>, vector<1x8x8xbf16> -> vector<4x8x8xbf16>
    %105 = vector.extract_strided_slice %87 {offsets = [0, 0], sizes = [8, 8], strides = [1, 1]} : vector<8x32xbf16> to vector<8x8xbf16>
    %106 = vector.extract_strided_slice %87 {offsets = [0, 8], sizes = [8, 8], strides = [1, 1]} : vector<8x32xbf16> to vector<8x8xbf16>
    %107 = vector.extract_strided_slice %87 {offsets = [0, 16], sizes = [8, 8], strides = [1, 1]} : vector<8x32xbf16> to vector<8x8xbf16>
    %108 = vector.extract_strided_slice %87 {offsets = [0, 24], sizes = [8, 8], strides = [1, 1]} : vector<8x32xbf16> to vector<8x8xbf16>
    %109 = vector.shape_cast %105 : vector<8x8xbf16> to vector<1x8x8xbf16>
    %110 = vector.shape_cast %106 : vector<8x8xbf16> to vector<1x8x8xbf16>
    %111 = vector.shape_cast %107 : vector<8x8xbf16> to vector<1x8x8xbf16>
    %112 = vector.shape_cast %108 : vector<8x8xbf16> to vector<1x8x8xbf16>
    %113 = tpu.concatenate %109, %110, %111, %112 in 0 : vector<1x8x8xbf16>, vector<1x8x8xbf16>, vector<1x8x8xbf16>, vector<1x8x8xbf16> -> vector<4x8x8xbf16>
    %114 = vector.extract_strided_slice %89 {offsets = [0, 0], sizes = [8, 8], strides = [1, 1]} : vector<8x32xbf16> to vector<8x8xbf16>
    %115 = vector.extract_strided_slice %89 {offsets = [0, 8], sizes = [8, 8], strides = [1, 1]} : vector<8x32xbf16> to vector<8x8xbf16>
    %116 = vector.extract_strided_slice %89 {offsets = [0, 16], sizes = [8, 8], strides = [1, 1]} : vector<8x32xbf16> to vector<8x8xbf16>
    %117 = vector.extract_strided_slice %89 {offsets = [0, 24], sizes = [8, 8], strides = [1, 1]} : vector<8x32xbf16> to vector<8x8xbf16>
    %118 = vector.shape_cast %114 : vector<8x8xbf16> to vector<1x8x8xbf16>
    %119 = vector.shape_cast %115 : vector<8x8xbf16> to vector<1x8x8xbf16>
    %120 = vector.shape_cast %116 : vector<8x8xbf16> to vector<1x8x8xbf16>
    %121 = vector.shape_cast %117 : vector<8x8xbf16> to vector<1x8x8xbf16>
    %122 = tpu.concatenate %118, %119, %120, %121 in 0 : vector<1x8x8xbf16>, vector<1x8x8xbf16>, vector<1x8x8xbf16>, vector<1x8x8xbf16> -> vector<4x8x8xbf16>
    %cst_46 = arith.constant -1.000000e+30 : f32
    %123 = vector.broadcast %cst_46 : f32 to vector<4x8x1xf32>
    %cst_47 = arith.constant 0.000000e+00 : f32
    %124 = vector.broadcast %cst_47 : f32 to vector<4x8x1xf32>
    %cst_48 = arith.constant 0.000000e+00 : f32
    %125 = vector.broadcast %cst_48 : f32 to vector<4x8x8xf32>
    "tpu.trace_start"() <{level = 10 : i32, message = "hqd,hkd->hqk"}> : () -> ()
    %cst_49 = arith.constant dense<0.000000e+00> : vector<4x8x8xf32>
    %126 = tpu.matmul %104, %113, %cst_49 {dimension_numbers = #tpu.dot_dimension_numbers<[2], [2], [1], [1], [0, 0, 0, 1, 1, 1], [0], [0]>} : vector<4x8x8xbf16>, vector<4x8x8xbf16>, vector<4x8x8xf32> -> vector<4x8x8xf32>
    "tpu.trace_stop"() : () -> ()
    %127 = tpu.iota {dimensions = array<i32: 2>} : vector<1x1x8xi32>
    %c0_i32 = arith.constant 0 : i32
    %128 = vector.broadcast %c0_i32 : i32 to vector<1x1x8xi32>
    %129 = arith.addi %128, %127 : vector<1x1x8xi32>
    %130 = vector.broadcast %3 : i32 to vector<1x1x8xi32>
    %131 = arith.cmpi slt, %129, %130 : vector<1x1x8xi32>
    %cst_50 = arith.constant -1.000000e+30 : f32
    %132 = vector.shape_cast %131 : vector<1x1x8xi1> to vector<1x1x8xi1>
    %133 = vector.broadcast %132 : vector<1x1x8xi1> to vector<4x8x8xi1>
    %134 = vector.broadcast %cst_50 : f32 to vector<4x8x8xf32>
    %135 = arith.select %133, %126, %134 : vector<4x8x8xi1>, vector<4x8x8xf32>
    %cst_51 = arith.constant dense<0xFF800000> : vector<4x8xf32>
    %136 = vector.multi_reduction <maximumf>, %135, %cst_51 [2] : vector<4x8x8xf32> to vector<4x8xf32>
    %137 = vector.shape_cast %136 : vector<4x8xf32> to vector<4x8x1xf32>
    %138 = arith.maximumf %123, %137 : vector<4x8x1xf32>
    %139 = arith.subf %123, %138 : vector<4x8x1xf32>
    %140 = math.exp %139 : vector<4x8x1xf32>
    %141 = vector.broadcast %138 : vector<4x8x1xf32> to vector<4x8x8xf32>
    %142 = arith.subf %135, %141 : vector<4x8x8xf32>
    %143 = math.exp %142 : vector<4x8x8xf32>
    %cst_52 = arith.constant 0.000000e+00 : f32
    %144 = vector.shape_cast %131 : vector<1x1x8xi1> to vector<1x1x8xi1>
    %145 = vector.broadcast %144 : vector<1x1x8xi1> to vector<4x8x8xi1>
    %146 = vector.broadcast %cst_52 : f32 to vector<4x8x8xf32>
    %147 = arith.select %145, %143, %146 : vector<4x8x8xi1>, vector<4x8x8xf32>
    %148 = arith.mulf %140, %124 : vector<4x8x1xf32>
    %cst_53 = arith.constant dense<0.000000e+00> : vector<4x8xf32>
    %149 = vector.multi_reduction <add>, %147, %cst_53 [2] : vector<4x8x8xf32> to vector<4x8xf32>
    %150 = vector.shape_cast %149 : vector<4x8xf32> to vector<4x8x1xf32>
    %151 = arith.addf %148, %150 : vector<4x8x1xf32>
    %152 = vector.broadcast %140 : vector<4x8x1xf32> to vector<4x8x8xf32>
    %153 = arith.mulf %152, %125 : vector<4x8x8xf32>
    %154 = arith.truncf %147 : vector<4x8x8xf32> to vector<4x8x8xbf16>
    "tpu.trace_start"() <{level = 10 : i32, message = "hqk,hkd->hqd"}> : () -> ()
    %cst_54 = arith.constant dense<0.000000e+00> : vector<4x8x8xf32>
    %155 = tpu.matmul %154, %122, %cst_54 {dimension_numbers = #tpu.dot_dimension_numbers<[2], [1], [1], [2], [0, 0, 0, 1, 1, 2], [0], [0]>} : vector<4x8x8xbf16>, vector<4x8x8xbf16>, vector<4x8x8xf32> -> vector<4x8x8xf32>
    "tpu.trace_stop"() : () -> ()
    %156 = arith.addf %153, %155 : vector<4x8x8xf32>
    %cst_55 = arith.constant 1.000000e-30 : f32
    %157 = vector.broadcast %cst_55 : f32 to vector<4x8x1xf32>
    %158 = arith.addf %151, %157 : vector<4x8x1xf32>
    %159 = tpu.reciprocal %158 {approx = true} : vector<4x8x1xf32> -> vector<4x8x1xf32>
    %160 = vector.broadcast %159 : vector<4x8x1xf32> to vector<4x8x8xf32>
    %161 = arith.mulf %156, %160 : vector<4x8x8xf32>
    %162 = vector.extract_strided_slice %161 {offsets = [0, 0, 0], sizes = [1, 8, 8], strides = [1, 1, 1]} : vector<4x8x8xf32> to vector<1x8x8xf32>
    %163 = vector.shape_cast %162 : vector<1x8x8xf32> to vector<8x8xf32>
    %164 = vector.extract_strided_slice %161 {offsets = [1, 0, 0], sizes = [1, 8, 8], strides = [1, 1, 1]} : vector<4x8x8xf32> to vector<1x8x8xf32>
    %165 = vector.shape_cast %164 : vector<1x8x8xf32> to vector<8x8xf32>
    %166 = vector.extract_strided_slice %161 {offsets = [2, 0, 0], sizes = [1, 8, 8], strides = [1, 1, 1]} : vector<4x8x8xf32> to vector<1x8x8xf32>
    %167 = vector.shape_cast %166 : vector<1x8x8xf32> to vector<8x8xf32>
    %168 = vector.extract_strided_slice %161 {offsets = [3, 0, 0], sizes = [1, 8, 8], strides = [1, 1, 1]} : vector<4x8x8xf32> to vector<1x8x8xf32>
    %169 = vector.shape_cast %168 : vector<1x8x8xf32> to vector<8x8xf32>
    %170 = tpu.concatenate %163, %165, %167, %169 in 1 : vector<8x8xf32>, vector<8x8xf32>, vector<8x8xf32>, vector<8x8xf32> -> vector<8x32xf32>
    %c0_56 = arith.constant 0 : index
    %c0_57 = arith.constant 0 : index
    %171 = vector.load %arg13[%c0_56, %c0_57] : memref<32x32xbf16, #tpu.memory_space<vmem>>, vector<32x32xbf16>
    %172 = arith.truncf %170 : vector<8x32xf32> to vector<8x32xbf16>
    %cst_58 = arith.constant dense<0.000000e+00> : vector<8x32xf32>
    %173 = tpu.matmul %172, %171, %cst_58 {dimension_numbers = #tpu.dot_dimension_numbers<[1], [0], [0], [1], [0, 0, 1, 1], [], []>} : vector<8x32xbf16>, vector<32x32xbf16>, vector<8x32xf32> -> vector<8x32xf32>
    %174 = arith.addf %51, %173 : vector<8x32xf32>
    %c0_59 = arith.constant 0 : index
    %c0_60 = arith.constant 0 : index
    %175 = vector.load %arg14[%c0_59, %c0_60] : memref<1x32xf32, #tpu.memory_space<vmem>>, vector<1x32xf32>
    %176 = vector.broadcast %175 : vector<1x32xf32> to vector<8x32xf32>
    %177 = arith.addf %174, %176 : vector<8x32xf32>
    %c0_61 = arith.constant 0 : index
    %c0_62 = arith.constant 0 : index
    %178 = vector.load %arg15[%c0_61, %c0_62] : memref<1x32xf32, #tpu.memory_space<vmem>>, vector<1x32xf32>
    %c0_63 = arith.constant 0 : index
    %c0_64 = arith.constant 0 : index
    %179 = vector.load %arg16[%c0_63, %c0_64] : memref<1x32xf32, #tpu.memory_space<vmem>>, vector<1x32xf32>
    %cst_65 = arith.constant dense<0.000000e+00> : vector<8xf32>
    %180 = vector.multi_reduction <add>, %177, %cst_65 [1] : vector<8x32xf32> to vector<8xf32>
    %181 = vector.shape_cast %180 : vector<8xf32> to vector<8x1xf32>
    %cst_66 = arith.constant 3.200000e+01 : f32
    %182 = vector.broadcast %cst_66 : f32 to vector<8x1xf32>
    %183 = arith.divf %181, %182 : vector<8x1xf32>
    %184 = vector.broadcast %183 : vector<8x1xf32> to vector<8x32xf32>
    %185 = arith.subf %177, %184 : vector<8x32xf32>
    %186 = arith.mulf %185, %185 : vector<8x32xf32>
    %cst_67 = arith.constant dense<0.000000e+00> : vector<8xf32>
    %187 = vector.multi_reduction <add>, %186, %cst_67 [1] : vector<8x32xf32> to vector<8xf32>
    %188 = vector.shape_cast %187 : vector<8xf32> to vector<8x1xf32>
    %cst_68 = arith.constant 3.200000e+01 : f32
    %189 = vector.broadcast %cst_68 : f32 to vector<8x1xf32>
    %190 = arith.divf %188, %189 : vector<8x1xf32>
    %191 = vector.broadcast %183 : vector<8x1xf32> to vector<8x32xf32>
    %192 = arith.subf %177, %191 : vector<8x32xf32>
    %cst_69 = arith.constant 9.99999996E-13 : f32
    %193 = vector.broadcast %cst_69 : f32 to vector<8x1xf32>
    %194 = arith.addf %190, %193 : vector<8x1xf32>
    %195 = math.rsqrt %194 : vector<8x1xf32>
    %196 = vector.broadcast %195 : vector<8x1xf32> to vector<8x32xf32>
    %197 = arith.mulf %192, %196 : vector<8x32xf32>
    %198 = vector.broadcast %178 : vector<1x32xf32> to vector<8x32xf32>
    %199 = arith.mulf %197, %198 : vector<8x32xf32>
    %200 = vector.broadcast %179 : vector<1x32xf32> to vector<8x32xf32>
    %201 = arith.addf %199, %200 : vector<8x32xf32>
    %202 = vector.broadcast %5 : i32 to vector<8x32xi32>
    %203 = arith.cmpi slt, %6, %202 : vector<8x32xi32>
    %cst_70 = arith.constant 0.000000e+00 : f32
    %204 = vector.broadcast %cst_70 : f32 to vector<8x32xf32>
    %205 = arith.select %203, %201, %204 : vector<8x32xi1>, vector<8x32xf32>
    %c0_71 = arith.constant 0 : index
    %c0_72 = arith.constant 0 : index
    %206 = vector.load %arg17[%c0_71, %c0_72] : memref<32x64xbf16, #tpu.memory_space<vmem>>, vector<32x64xbf16>
    %207 = arith.truncf %205 : vector<8x32xf32> to vector<8x32xbf16>
    %cst_73 = arith.constant dense<0.000000e+00> : vector<8x64xf32>
    %208 = tpu.matmul %207, %206, %cst_73 {dimension_numbers = #tpu.dot_dimension_numbers<[1], [0], [0], [1], [0, 0, 1, 1], [], []>} : vector<8x32xbf16>, vector<32x64xbf16>, vector<8x64xf32> -> vector<8x64xf32>
    %c0_74 = arith.constant 0 : index
    %c0_75 = arith.constant 0 : index
    %209 = vector.load %arg18[%c0_74, %c0_75] : memref<1x64xf32, #tpu.memory_space<vmem>>, vector<1x64xf32>
    %210 = vector.broadcast %209 : vector<1x64xf32> to vector<8x64xf32>
    %211 = arith.addf %208, %210 : vector<8x64xf32>
    %212 = vector.extract_strided_slice %211 {offsets = [0, 0], sizes = [8, 32], strides = [1, 1]} : vector<8x64xf32> to vector<8x32xf32>
    %213 = vector.extract_strided_slice %211 {offsets = [0, 32], sizes = [8, 32], strides = [1, 1]} : vector<8x64xf32> to vector<8x32xf32>
    %214 = arith.negf %213 : vector<8x32xf32>
    %215 = math.exp %214 : vector<8x32xf32>
    %cst_76 = arith.constant 1.000000e+00 : f32
    %216 = vector.broadcast %cst_76 : f32 to vector<8x32xf32>
    %217 = arith.addf %216, %215 : vector<8x32xf32>
    %218 = arith.divf %216, %217 : vector<8x32xf32>
    %219 = arith.mulf %212, %218 : vector<8x32xf32>
    %c0_77 = arith.constant 0 : index
    %c0_78 = arith.constant 0 : index
    %c0_79 = arith.constant 0 : index
    %220 = vector.load %arg19[%c0_77, %c0_78, %c0_79] : memref<3x1x32xf32, #tpu.memory_space<vmem>>, vector<3x1x32xf32>
    %cst_80 = arith.constant 0.000000e+00 : f32
    %221 = vector.broadcast %cst_80 : f32 to vector<8x32xf32>
    %c0_81 = arith.constant 0 : index
    %c0_82 = arith.constant 0 : index
    %222 = vector.load %arg20[%c0_81, %c0_82] : memref<1x32xf32, #tpu.memory_space<vmem>>, vector<1x32xf32>
    %223 = vector.broadcast %222 : vector<1x32xf32> to vector<8x32xf32>
    %224 = arith.addf %221, %223 : vector<8x32xf32>
    %c1_i32 = arith.constant 1 : i32
    %225 = tpu.dynamic_rotate %219 by %c1_i32 dim 0 : vector<8x32xf32>, i32 -> vector<8x32xf32>
    %c1_i32_83 = arith.constant 1 : i32
    %226 = vector.broadcast %c1_i32_83 : i32 to vector<8x32xi32>
    %227 = arith.cmpi sge, %6, %226 : vector<8x32xi32>
    %cst_84 = arith.constant 0.000000e+00 : f32
    %228 = vector.broadcast %cst_84 : f32 to vector<8x32xf32>
    %229 = arith.select %227, %225, %228 : vector<8x32xi1>, vector<8x32xf32>
    %230 = vector.extract_strided_slice %220 {offsets = [0, 0, 0], sizes = [1, 1, 32], strides = [1, 1, 1]} : vector<3x1x32xf32> to vector<1x1x32xf32>
    %231 = vector.shape_cast %230 : vector<1x1x32xf32> to vector<1x32xf32>
    %232 = vector.broadcast %231 : vector<1x32xf32> to vector<8x32xf32>
    %233 = arith.mulf %229, %232 : vector<8x32xf32>
    %234 = arith.addf %224, %233 : vector<8x32xf32>
    %235 = vector.extract_strided_slice %220 {offsets = [1, 0, 0], sizes = [1, 1, 32], strides = [1, 1, 1]} : vector<3x1x32xf32> to vector<1x1x32xf32>
    %236 = vector.shape_cast %235 : vector<1x1x32xf32> to vector<1x32xf32>
    %237 = vector.broadcast %236 : vector<1x32xf32> to vector<8x32xf32>
    %238 = arith.mulf %219, %237 : vector<8x32xf32>
    %239 = arith.addf %234, %238 : vector<8x32xf32>
    %c7_i32 = arith.constant 7 : i32
    %240 = tpu.dynamic_rotate %219 by %c7_i32 dim 0 : vector<8x32xf32>, i32 -> vector<8x32xf32>
    %c7_i32_85 = arith.constant 7 : i32
    %241 = vector.broadcast %c7_i32_85 : i32 to vector<8x32xi32>
    %242 = arith.cmpi slt, %6, %241 : vector<8x32xi32>
    %cst_86 = arith.constant 0.000000e+00 : f32
    %243 = vector.broadcast %cst_86 : f32 to vector<8x32xf32>
    %244 = arith.select %242, %240, %243 : vector<8x32xi1>, vector<8x32xf32>
    %245 = vector.extract_strided_slice %220 {offsets = [2, 0, 0], sizes = [1, 1, 32], strides = [1, 1, 1]} : vector<3x1x32xf32> to vector<1x1x32xf32>
    %246 = vector.shape_cast %245 : vector<1x1x32xf32> to vector<1x32xf32>
    %247 = vector.broadcast %246 : vector<1x32xf32> to vector<8x32xf32>
    %248 = arith.mulf %244, %247 : vector<8x32xf32>
    %249 = arith.addf %239, %248 : vector<8x32xf32>
    %c0_87 = arith.constant 0 : index
    %c0_88 = arith.constant 0 : index
    %250 = vector.load %arg21[%c0_87, %c0_88] : memref<1x32xf32, #tpu.memory_space<vmem>>, vector<1x32xf32>
    %c0_89 = arith.constant 0 : index
    %c0_90 = arith.constant 0 : index
    %251 = vector.load %arg22[%c0_89, %c0_90] : memref<1x32xf32, #tpu.memory_space<vmem>>, vector<1x32xf32>
    %cst_91 = arith.constant dense<0.000000e+00> : vector<8xf32>
    %252 = vector.multi_reduction <add>, %249, %cst_91 [1] : vector<8x32xf32> to vector<8xf32>
    %253 = vector.shape_cast %252 : vector<8xf32> to vector<8x1xf32>
    %cst_92 = arith.constant 3.200000e+01 : f32
    %254 = vector.broadcast %cst_92 : f32 to vector<8x1xf32>
    %255 = arith.divf %253, %254 : vector<8x1xf32>
    %256 = vector.broadcast %255 : vector<8x1xf32> to vector<8x32xf32>
    %257 = arith.subf %249, %256 : vector<8x32xf32>
    %258 = arith.mulf %257, %257 : vector<8x32xf32>
    %cst_93 = arith.constant dense<0.000000e+00> : vector<8xf32>
    %259 = vector.multi_reduction <add>, %258, %cst_93 [1] : vector<8x32xf32> to vector<8xf32>
    %260 = vector.shape_cast %259 : vector<8xf32> to vector<8x1xf32>
    %cst_94 = arith.constant 3.200000e+01 : f32
    %261 = vector.broadcast %cst_94 : f32 to vector<8x1xf32>
    %262 = arith.divf %260, %261 : vector<8x1xf32>
    %263 = vector.broadcast %255 : vector<8x1xf32> to vector<8x32xf32>
    %264 = arith.subf %249, %263 : vector<8x32xf32>
    %cst_95 = arith.constant 9.99999974E-6 : f32
    %265 = vector.broadcast %cst_95 : f32 to vector<8x1xf32>
    %266 = arith.addf %262, %265 : vector<8x1xf32>
    %267 = math.rsqrt %266 : vector<8x1xf32>
    %268 = vector.broadcast %267 : vector<8x1xf32> to vector<8x32xf32>
    %269 = arith.mulf %264, %268 : vector<8x32xf32>
    %270 = vector.broadcast %250 : vector<1x32xf32> to vector<8x32xf32>
    %271 = arith.mulf %269, %270 : vector<8x32xf32>
    %272 = vector.broadcast %251 : vector<1x32xf32> to vector<8x32xf32>
    %273 = arith.addf %271, %272 : vector<8x32xf32>
    %274 = arith.negf %273 : vector<8x32xf32>
    %275 = math.exp %274 : vector<8x32xf32>
    %cst_96 = arith.constant 1.000000e+00 : f32
    %276 = vector.broadcast %cst_96 : f32 to vector<8x32xf32>
    %277 = arith.addf %276, %275 : vector<8x32xf32>
    %278 = arith.divf %276, %277 : vector<8x32xf32>
    %279 = arith.mulf %273, %278 : vector<8x32xf32>
    %c0_97 = arith.constant 0 : index
    %c0_98 = arith.constant 0 : index
    %280 = vector.load %arg23[%c0_97, %c0_98] : memref<32x32xbf16, #tpu.memory_space<vmem>>, vector<32x32xbf16>
    %281 = arith.truncf %279 : vector<8x32xf32> to vector<8x32xbf16>
    %cst_99 = arith.constant dense<0.000000e+00> : vector<8x32xf32>
    %282 = tpu.matmul %281, %280, %cst_99 {dimension_numbers = #tpu.dot_dimension_numbers<[1], [0], [0], [1], [0, 0, 1, 1], [], []>} : vector<8x32xbf16>, vector<32x32xbf16>, vector<8x32xf32> -> vector<8x32xf32>
    %c0_100 = arith.constant 0 : index
    %c0_101 = arith.constant 0 : index
    %283 = vector.load %arg24[%c0_100, %c0_101] : memref<1x32xf32, #tpu.memory_space<vmem>>, vector<1x32xf32>
    %284 = vector.broadcast %283 : vector<1x32xf32> to vector<8x32xf32>
    %285 = arith.addf %282, %284 : vector<8x32xf32>
    %286 = vector.broadcast %5 : i32 to vector<8x32xi32>
    %287 = arith.cmpi slt, %6, %286 : vector<8x32xi32>
    %cst_102 = arith.constant 0.000000e+00 : f32
    %288 = vector.broadcast %cst_102 : f32 to vector<8x32xf32>
    %289 = arith.select %287, %285, %288 : vector<8x32xi1>, vector<8x32xf32>
    %290 = arith.addf %177, %289 : vector<8x32xf32>
    %c0_103 = arith.constant 0 : index
    %c0_104 = arith.constant 0 : index
    %291 = vector.load %arg25[%c0_103, %c0_104] : memref<1x32xf32, #tpu.memory_space<vmem>>, vector<1x32xf32>
    %c0_105 = arith.constant 0 : index
    %c0_106 = arith.constant 0 : index
    %292 = vector.load %arg26[%c0_105, %c0_106] : memref<1x32xf32, #tpu.memory_space<vmem>>, vector<1x32xf32>
    %cst_107 = arith.constant dense<0.000000e+00> : vector<8xf32>
    %293 = vector.multi_reduction <add>, %290, %cst_107 [1] : vector<8x32xf32> to vector<8xf32>
    %294 = vector.shape_cast %293 : vector<8xf32> to vector<8x1xf32>
    %cst_108 = arith.constant 3.200000e+01 : f32
    %295 = vector.broadcast %cst_108 : f32 to vector<8x1xf32>
    %296 = arith.divf %294, %295 : vector<8x1xf32>
    %297 = vector.broadcast %296 : vector<8x1xf32> to vector<8x32xf32>
    %298 = arith.subf %290, %297 : vector<8x32xf32>
    %299 = arith.mulf %298, %298 : vector<8x32xf32>
    %cst_109 = arith.constant dense<0.000000e+00> : vector<8xf32>
    %300 = vector.multi_reduction <add>, %299, %cst_109 [1] : vector<8x32xf32> to vector<8xf32>
    %301 = vector.shape_cast %300 : vector<8xf32> to vector<8x1xf32>
    %cst_110 = arith.constant 3.200000e+01 : f32
    %302 = vector.broadcast %cst_110 : f32 to vector<8x1xf32>
    %303 = arith.divf %301, %302 : vector<8x1xf32>
    %304 = vector.broadcast %296 : vector<8x1xf32> to vector<8x32xf32>
    %305 = arith.subf %290, %304 : vector<8x32xf32>
    %cst_111 = arith.constant 9.99999996E-13 : f32
    %306 = vector.broadcast %cst_111 : f32 to vector<8x1xf32>
    %307 = arith.addf %303, %306 : vector<8x1xf32>
    %308 = math.rsqrt %307 : vector<8x1xf32>
    %309 = vector.broadcast %308 : vector<8x1xf32> to vector<8x32xf32>
    %310 = arith.mulf %305, %309 : vector<8x32xf32>
    %311 = vector.broadcast %291 : vector<1x32xf32> to vector<8x32xf32>
    %312 = arith.mulf %310, %311 : vector<8x32xf32>
    %313 = vector.broadcast %292 : vector<1x32xf32> to vector<8x32xf32>
    %314 = arith.addf %312, %313 : vector<8x32xf32>
    %c0_112 = arith.constant 0 : index
    %c0_113 = arith.constant 0 : index
    %315 = vector.load %arg27[%c0_112, %c0_113] : memref<32x64xbf16, #tpu.memory_space<vmem>>, vector<32x64xbf16>
    %316 = arith.truncf %314 : vector<8x32xf32> to vector<8x32xbf16>
    %cst_114 = arith.constant dense<0.000000e+00> : vector<8x64xf32>
    %317 = tpu.matmul %316, %315, %cst_114 {dimension_numbers = #tpu.dot_dimension_numbers<[1], [0], [0], [1], [0, 0, 1, 1], [], []>} : vector<8x32xbf16>, vector<32x64xbf16>, vector<8x64xf32> -> vector<8x64xf32>
    %c0_115 = arith.constant 0 : index
    %c0_116 = arith.constant 0 : index
    %318 = vector.load %arg28[%c0_115, %c0_116] : memref<1x64xf32, #tpu.memory_space<vmem>>, vector<1x64xf32>
    %319 = vector.broadcast %318 : vector<1x64xf32> to vector<8x64xf32>
    %320 = arith.addf %317, %319 : vector<8x64xf32>
    %321 = arith.negf %320 : vector<8x64xf32>
    %322 = math.exp %321 : vector<8x64xf32>
    %cst_117 = arith.constant 1.000000e+00 : f32
    %323 = vector.broadcast %cst_117 : f32 to vector<8x64xf32>
    %324 = arith.addf %323, %322 : vector<8x64xf32>
    %325 = arith.divf %323, %324 : vector<8x64xf32>
    %326 = arith.mulf %320, %325 : vector<8x64xf32>
    %c0_118 = arith.constant 0 : index
    %c0_119 = arith.constant 0 : index
    %327 = vector.load %arg29[%c0_118, %c0_119] : memref<64x32xbf16, #tpu.memory_space<vmem>>, vector<64x32xbf16>
    %328 = arith.truncf %326 : vector<8x64xf32> to vector<8x64xbf16>
    %cst_120 = arith.constant dense<0.000000e+00> : vector<8x32xf32>
    %329 = tpu.matmul %328, %327, %cst_120 {dimension_numbers = #tpu.dot_dimension_numbers<[1], [0], [0], [1], [0, 0, 1, 1], [], []>} : vector<8x64xbf16>, vector<64x32xbf16>, vector<8x32xf32> -> vector<8x32xf32>
    %c0_121 = arith.constant 0 : index
    %c0_122 = arith.constant 0 : index
    %330 = vector.load %arg30[%c0_121, %c0_122] : memref<1x32xf32, #tpu.memory_space<vmem>>, vector<1x32xf32>
    %331 = vector.broadcast %330 : vector<1x32xf32> to vector<8x32xf32>
    %332 = arith.addf %329, %331 : vector<8x32xf32>
    %cst_123 = arith.constant 5.000000e-01 : f32
    %333 = vector.broadcast %cst_123 : f32 to vector<8x32xf32>
    %334 = arith.mulf %333, %332 : vector<8x32xf32>
    %335 = arith.addf %290, %334 : vector<8x32xf32>
    %c0_124 = arith.constant 0 : index
    %c0_125 = arith.constant 0 : index
    %336 = vector.load %arg31[%c0_124, %c0_125] : memref<1x32xf32, #tpu.memory_space<vmem>>, vector<1x32xf32>
    %c0_126 = arith.constant 0 : index
    %c0_127 = arith.constant 0 : index
    %337 = vector.load %arg32[%c0_126, %c0_127] : memref<1x32xf32, #tpu.memory_space<vmem>>, vector<1x32xf32>
    %cst_128 = arith.constant dense<0.000000e+00> : vector<8xf32>
    %338 = vector.multi_reduction <add>, %335, %cst_128 [1] : vector<8x32xf32> to vector<8xf32>
    %339 = vector.shape_cast %338 : vector<8xf32> to vector<8x1xf32>
    %cst_129 = arith.constant 3.200000e+01 : f32
    %340 = vector.broadcast %cst_129 : f32 to vector<8x1xf32>
    %341 = arith.divf %339, %340 : vector<8x1xf32>
    %342 = vector.broadcast %341 : vector<8x1xf32> to vector<8x32xf32>
    %343 = arith.subf %335, %342 : vector<8x32xf32>
    %344 = arith.mulf %343, %343 : vector<8x32xf32>
    %cst_130 = arith.constant dense<0.000000e+00> : vector<8xf32>
    %345 = vector.multi_reduction <add>, %344, %cst_130 [1] : vector<8x32xf32> to vector<8xf32>
    %346 = vector.shape_cast %345 : vector<8xf32> to vector<8x1xf32>
    %cst_131 = arith.constant 3.200000e+01 : f32
    %347 = vector.broadcast %cst_131 : f32 to vector<8x1xf32>
    %348 = arith.divf %346, %347 : vector<8x1xf32>
    %349 = vector.broadcast %341 : vector<8x1xf32> to vector<8x32xf32>
    %350 = arith.subf %335, %349 : vector<8x32xf32>
    %cst_132 = arith.constant 9.99999996E-13 : f32
    %351 = vector.broadcast %cst_132 : f32 to vector<8x1xf32>
    %352 = arith.addf %348, %351 : vector<8x1xf32>
    %353 = math.rsqrt %352 : vector<8x1xf32>
    %354 = vector.broadcast %353 : vector<8x1xf32> to vector<8x32xf32>
    %355 = arith.mulf %350, %354 : vector<8x32xf32>
    %356 = vector.broadcast %336 : vector<1x32xf32> to vector<8x32xf32>
    %357 = arith.mulf %355, %356 : vector<8x32xf32>
    %358 = vector.broadcast %337 : vector<1x32xf32> to vector<8x32xf32>
    %359 = arith.addf %357, %358 : vector<8x32xf32>
    %c0_133 = arith.constant 0 : index
    %c0_134 = arith.constant 0 : index
    %c0_135 = arith.constant 0 : index
    %360 = vector.load %arg33[%c0_133, %c0_134, %c0_135] : memref<1x8x32xf32, #tpu.memory_space<vmem>>, vector<1x8x32xf32>
    %361 = vector.shape_cast %360 : vector<1x8x32xf32> to vector<8x32xf32>
    %362 = vector.shape_cast %359 : vector<8x32xf32> to vector<1x8x32xf32>
    tpu.vector_store %arg33[%c0_133, %c0_134, %c0_135], %362 {strides = array<i32>} : memref<1x8x32xf32, #tpu.memory_space<vmem>>, vector<1x8x32xf32>,
    return
  }
  func.func @transform_0(%arg0: i32, %arg1: memref<2x2xi32, #tpu.memory_space<smem>>) -> (i32, i32, i32) {
    %c0_i32 = arith.constant 0 : i32
    %c0_i32_0 = arith.constant 0 : i32
    %c0_i32_1 = arith.constant 0 : i32
    return %arg0, %c0_i32, %c0_i32_0 : i32, i32, i32
  }
  func.func @transform_1(%arg0: i32, %arg1: memref<2x2xi32, #tpu.memory_space<smem>>) -> (i32, i32) {
    %c0_i32 = arith.constant 0 : i32
    %c0_i32_0 = arith.constant 0 : i32
    %c0_i32_1 = arith.constant 0 : i32
    return %c0_i32, %c0_i32_0 : i32, i32
  }
  func.func @transform_2(%arg0: i32, %arg1: memref<2x2xi32, #tpu.memory_space<smem>>) -> (i32, i32) {
    %c0_i32 = arith.constant 0 : i32
    %c0_i32_0 = arith.constant 0 : i32
    %c0_i32_1 = arith.constant 0 : i32
    return %c0_i32, %c0_i32_0 : i32, i32
  }
  func.func @transform_3(%arg0: i32, %arg1: memref<2x2xi32, #tpu.memory_space<smem>>) -> (i32, i32) {
    %c0_i32 = arith.constant 0 : i32
    %c0_i32_0 = arith.constant 0 : i32
    %c0_i32_1 = arith.constant 0 : i32
    return %c0_i32, %c0_i32_0 : i32, i32
  }
  func.func @transform_4(%arg0: i32, %arg1: memref<2x2xi32, #tpu.memory_space<smem>>) -> (i32, i32) {
    %c0_i32 = arith.constant 0 : i32
    %c0_i32_0 = arith.constant 0 : i32
    %c0_i32_1 = arith.constant 0 : i32
    return %c0_i32, %c0_i32_0 : i32, i32
  }
  func.func @transform_5(%arg0: i32, %arg1: memref<2x2xi32, #tpu.memory_space<smem>>) -> (i32, i32) {
    %c0_i32 = arith.constant 0 : i32
    %c0_i32_0 = arith.constant 0 : i32
    %c0_i32_1 = arith.constant 0 : i32
    return %c0_i32, %c0_i32_0 : i32, i32
  }
  func.func @transform_6(%arg0: i32, %arg1: memref<2x2xi32, #tpu.memory_space<smem>>) -> (i32, i32) {
    %c0_i32 = arith.constant 0 : i32
    %c0_i32_0 = arith.constant 0 : i32
    %c0_i32_1 = arith.constant 0 : i32
    return %c0_i32, %c0_i32_0 : i32, i32
  }
  func.func @transform_7(%arg0: i32, %arg1: memref<2x2xi32, #tpu.memory_space<smem>>) -> (i32, i32) {
    %c0_i32 = arith.constant 0 : i32
    %c0_i32_0 = arith.constant 0 : i32
    %c0_i32_1 = arith.constant 0 : i32
    return %c0_i32, %c0_i32_0 : i32, i32
  }
  func.func @transform_8(%arg0: i32, %arg1: memref<2x2xi32, #tpu.memory_space<smem>>) -> (i32, i32) {
    %c0_i32 = arith.constant 0 : i32
    %c0_i32_0 = arith.constant 0 : i32
    %c0_i32_1 = arith.constant 0 : i32
    return %c0_i32, %c0_i32_0 : i32, i32
  }
  func.func @transform_9(%arg0: i32, %arg1: memref<2x2xi32, #tpu.memory_space<smem>>) -> (i32, i32) {
    %c0_i32 = arith.constant 0 : i32
    %c0_i32_0 = arith.constant 0 : i32
    %c0_i32_1 = arith.constant 0 : i32
    return %c0_i32, %c0_i32_0 : i32, i32
  }
  func.func @transform_10(%arg0: i32, %arg1: memref<2x2xi32, #tpu.memory_space<smem>>) -> (i32, i32) {
    %c0_i32 = arith.constant 0 : i32
    %c0_i32_0 = arith.constant 0 : i32
    %c0_i32_1 = arith.constant 0 : i32
    return %c0_i32, %c0_i32_0 : i32, i32
  }
  func.func @transform_11(%arg0: i32, %arg1: memref<2x2xi32, #tpu.memory_space<smem>>) -> (i32, i32) {
    %c0_i32 = arith.constant 0 : i32
    %c0_i32_0 = arith.constant 0 : i32
    %c0_i32_1 = arith.constant 0 : i32
    return %c0_i32, %c0_i32_0 : i32, i32
  }
  func.func @transform_12(%arg0: i32, %arg1: memref<2x2xi32, #tpu.memory_space<smem>>) -> (i32, i32) {
    %c0_i32 = arith.constant 0 : i32
    %c0_i32_0 = arith.constant 0 : i32
    %c0_i32_1 = arith.constant 0 : i32
    return %c0_i32, %c0_i32_0 : i32, i32
  }
  func.func @transform_13(%arg0: i32, %arg1: memref<2x2xi32, #tpu.memory_space<smem>>) -> (i32, i32) {
    %c0_i32 = arith.constant 0 : i32
    %c0_i32_0 = arith.constant 0 : i32
    %c0_i32_1 = arith.constant 0 : i32
    return %c0_i32, %c0_i32_0 : i32, i32
  }
  func.func @transform_14(%arg0: i32, %arg1: memref<2x2xi32, #tpu.memory_space<smem>>) -> (i32, i32) {
    %c0_i32 = arith.constant 0 : i32
    %c0_i32_0 = arith.constant 0 : i32
    %c0_i32_1 = arith.constant 0 : i32
    return %c0_i32, %c0_i32_0 : i32, i32
  }
  func.func @transform_15(%arg0: i32, %arg1: memref<2x2xi32, #tpu.memory_space<smem>>) -> (i32, i32) {
    %c0_i32 = arith.constant 0 : i32
    %c0_i32_0 = arith.constant 0 : i32
    %c0_i32_1 = arith.constant 0 : i32
    return %c0_i32, %c0_i32_0 : i32, i32
  }
  func.func @transform_16(%arg0: i32, %arg1: memref<2x2xi32, #tpu.memory_space<smem>>) -> (i32, i32) {
    %c0_i32 = arith.constant 0 : i32
    %c0_i32_0 = arith.constant 0 : i32
    %c0_i32_1 = arith.constant 0 : i32
    return %c0_i32, %c0_i32_0 : i32, i32
  }
  func.func @transform_17(%arg0: i32, %arg1: memref<2x2xi32, #tpu.memory_space<smem>>) -> (i32, i32, i32) {
    %c0_i32 = arith.constant 0 : i32
    %c0_i32_0 = arith.constant 0 : i32
    %c0_i32_1 = arith.constant 0 : i32
    %c0_i32_2 = arith.constant 0 : i32
    return %c0_i32, %c0_i32_0, %c0_i32_1 : i32, i32, i32
  }
  func.func @transform_18(%arg0: i32, %arg1: memref<2x2xi32, #tpu.memory_space<smem>>) -> (i32, i32) {
    %c0_i32 = arith.constant 0 : i32
    %c0_i32_0 = arith.constant 0 : i32
    %c0_i32_1 = arith.constant 0 : i32
    return %c0_i32, %c0_i32_0 : i32, i32
  }
  func.func @transform_19(%arg0: i32, %arg1: memref<2x2xi32, #tpu.memory_space<smem>>) -> (i32, i32) {
    %c0_i32 = arith.constant 0 : i32
    %c0_i32_0 = arith.constant 0 : i32
    %c0_i32_1 = arith.constant 0 : i32
    return %c0_i32, %c0_i32_0 : i32, i32
  }
  func.func @transform_20(%arg0: i32, %arg1: memref<2x2xi32, #tpu.memory_space<smem>>) -> (i32, i32) {
    %c0_i32 = arith.constant 0 : i32
    %c0_i32_0 = arith.constant 0 : i32
    %c0_i32_1 = arith.constant 0 : i32
    return %c0_i32, %c0_i32_0 : i32, i32
  }
  func.func @transform_21(%arg0: i32, %arg1: memref<2x2xi32, #tpu.memory_space<smem>>) -> (i32, i32) {
    %c0_i32 = arith.constant 0 : i32
    %c0_i32_0 = arith.constant 0 : i32
    %c0_i32_1 = arith.constant 0 : i32
    return %c0_i32, %c0_i32_0 : i32, i32
  }
  func.func @transform_22(%arg0: i32, %arg1: memref<2x2xi32, #tpu.memory_space<smem>>) -> (i32, i32) {
    %c0_i32 = arith.constant 0 : i32
    %c0_i32_0 = arith.constant 0 : i32
    %c0_i32_1 = arith.constant 0 : i32
    return %c0_i32, %c0_i32_0 : i32, i32
  }
  func.func @transform_23(%arg0: i32, %arg1: memref<2x2xi32, #tpu.memory_space<smem>>) -> (i32, i32) {
    %c0_i32 = arith.constant 0 : i32
    %c0_i32_0 = arith.constant 0 : i32
    %c0_i32_1 = arith.constant 0 : i32
    return %c0_i32, %c0_i32_0 : i32, i32
  }
  func.func @transform_24(%arg0: i32, %arg1: memref<2x2xi32, #tpu.memory_space<smem>>) -> (i32, i32) {
    %c0_i32 = arith.constant 0 : i32
    %c0_i32_0 = arith.constant 0 : i32
    %c0_i32_1 = arith.constant 0 : i32
    return %c0_i32, %c0_i32_0 : i32, i32
  }
  func.func @transform_25(%arg0: i32, %arg1: memref<2x2xi32, #tpu.memory_space<smem>>) -> (i32, i32) {
    %c0_i32 = arith.constant 0 : i32
    %c0_i32_0 = arith.constant 0 : i32
    %c0_i32_1 = arith.constant 0 : i32
    return %c0_i32, %c0_i32_0 : i32, i32
  }
  func.func @transform_26(%arg0: i32, %arg1: memref<2x2xi32, #tpu.memory_space<smem>>) -> (i32, i32) {
    %c0_i32 = arith.constant 0 : i32
    %c0_i32_0 = arith.constant 0 : i32
    %c0_i32_1 = arith.constant 0 : i32
    return %c0_i32, %c0_i32_0 : i32, i32
  }
  func.func @transform_27(%arg0: i32, %arg1: memref<2x2xi32, #tpu.memory_space<smem>>) -> (i32, i32) {
    %c0_i32 = arith.constant 0 : i32
    %c0_i32_0 = arith.constant 0 : i32
    %c0_i32_1 = arith.constant 0 : i32
    return %c0_i32, %c0_i32_0 : i32, i32
  }
  func.func @transform_28(%arg0: i32, %arg1: memref<2x2xi32, #tpu.memory_space<smem>>) -> (i32, i32) {
    %c0_i32 = arith.constant 0 : i32
    %c0_i32_0 = arith.constant 0 : i32
    %c0_i32_1 = arith.constant 0 : i32
    return %c0_i32, %c0_i32_0 : i32, i32
  }
  func.func @transform_29(%arg0: i32, %arg1: memref<2x2xi32, #tpu.memory_space<smem>>) -> (i32, i32) {
    %c0_i32 = arith.constant 0 : i32
    %c0_i32_0 = arith.constant 0 : i32
    %c0_i32_1 = arith.constant 0 : i32
    return %c0_i32, %c0_i32_0 : i32, i32
  }
  func.func @transform_30(%arg0: i32, %arg1: memref<2x2xi32, #tpu.memory_space<smem>>) -> (i32, i32) {
    %c0_i32 = arith.constant 0 : i32
    %c0_i32_0 = arith.constant 0 : i32
    %c0_i32_1 = arith.constant 0 : i32
    return %c0_i32, %c0_i32_0 : i32, i32
  }
  func.func @transform_31(%arg0: i32, %arg1: memref<2x2xi32, #tpu.memory_space<smem>>) -> (i32, i32, i32) {
    %c0_i32 = arith.constant 0 : i32
    %c0_i32_0 = arith.constant 0 : i32
    %c0_i32_1 = arith.constant 0 : i32
    return %arg0, %c0_i32, %c0_i32_0 : i32, i32, i32
  }
  func.func @transform_32(%arg0: i32, %arg1: memref<2x2xi32, #tpu.memory_space<smem>>) -> (i32, i32, i32, i32) {
    %c0_i32 = arith.constant 0 : i32
    %c0_i32_0 = arith.constant 0 : i32
    %c0_i32_1 = arith.constant 0 : i32
    %c0_i32_2 = arith.constant 0 : i32
    return %arg0, %c0_i32, %c0_i32_0, %c0_i32_1 : i32, i32, i32, i32
  }
}

</mosaic_0001>

<bundles_post_ra>
// kernel: tpu_custom_call.1
= control target key start
LH: loop header
LB: loop body
LE: loop exit
PB: predicated region body
PF: predicated region fallthrough
CT: control target
= control target key end

     0   :  { %s3492_s6 = smov 1   ;;  %s3493_s10 = smov 2   ;;  %s4211_s0 = inlined_call_operand.smem [shape: u32[34], index: -1, kind: input, shape index: {}] }
   0x1   :  { %s3554_s5 = sld [smem:[%s4211_s0]]   ;;  %s3494_s14 = smov 3  }
   0x2   :  { %s3559_s9 = sld [smem:[%s4211_s0 + %s3492_s6]]   ;;  %s3495_s18 = smov 4  }
   0x3   :  { %s3564_s13 = sld [smem:[%s4211_s0 + %s3493_s10]]   ;;  %s3496_s22 = smov 5  }
   0x4   :  { %s3569_s17 = sld [smem:[%s4211_s0 + %s3494_s14]]   ;;  %s3497_s26 = smov 6  }
   0x5   :  { %s3574_s21 = sld [smem:[%s4211_s0 + %s3495_s18]]   ;;  %s3498_s30 = smov 7  }
   0x6   :  { %s3579_s25 = sld [smem:[%s4211_s0 + %s3496_s22]]   ;;  %s3499_s4 = smov 8  }
   0x7   :  { %s3584_s29 = sld [smem:[%s4211_s0 + %s3497_s26]]   ;;  %s3500_s10 = smov 9  }
   0x8   :  { %s3589_s3 = sld [smem:[%s4211_s0 + %s3498_s30]]   ;;  %s3501_s15 = smov 10  }
   0x9   :  { %s3594_s8 = sld [smem:[%s4211_s0 + %s3499_s4]]   ;;  %s3502_s20 = smov 11  }
   0xa   :  { %s3599_s14 = sld [smem:[%s4211_s0 + %s3500_s10]]   ;;  %s3503_s26 = smov 12  }
   0xb   :  { %s3604_s19 = sld [smem:[%s4211_s0 + %s3501_s15]]   ;;  %s3504_s1 = smov 13  }
   0xc   :  { %4232 = sst [smem:[#allocation26_spill]] %s3579_s25  ;;  %s3505_s7 = smov 14  }
   0xd   :  { %s3609_s24 = sld [smem:[%s4211_s0 + %s3502_s20]]   ;;  %s3506_s15 = smov 15  }
   0xe   :  { %4233 = sst [smem:[#allocation27_spill]] %s3589_s3  ;;  %s3507_s22 = smov 16  }
   0xf   :  { %4234 = sst [smem:[#allocation28_spill]] %s3594_s8  ;;  %s3508_s28 = smov 17  }
  0x10   :  { %s3614_s30 = sld [smem:[%s4211_s0 + %s3503_s26]]   ;;  %s3519_s23 = smov 28  }
  0x11   :  { %s3619_s6 = sld [smem:[%s4211_s0 + %s3504_s1]]   ;;  %s3520_s2 = smov 29  }
  0x12   :  { %s3624_s12 = sld [smem:[%s4211_s0 + %s3505_s7]]   ;;  %s3509_s7 = smov 18  }
  0x13   :  { %s3629_s20 = sld [smem:[%s4211_s0 + %s3506_s15]]   ;;  %s3510_s15 = smov 19  }
  0x14   :  { %s3634_s27 = sld [smem:[%s4211_s0 + %s3507_s22]]   ;;  %s3511_s22 = smov 20  }
  0x15   :  { %s3639_s4 = sld [smem:[%s4211_s0 + %s3508_s28]]   ;;  %s3512_s28 = smov 21  }
  0x16   :  { %s3521_s11 = smov 30  }
  0x17   :  { %4235 = sst [smem:[#allocation29_spill]] %s3619_s6 }
  0x18   :  { %4236 = sst [smem:[#allocation30_spill]] %s3624_s12 }
  0x19   :  { %4237 = sst [smem:[#allocation31_spill]] %s3629_s20 }
  0x1a   :  { %4238 = sst [smem:[#allocation32_spill]] %s3634_s27 }
  0x1b   :  { %4239 = sst [smem:[#allocation33_spill]] %s3639_s4 }
  0x1c   :  { %s3644_s12 = sld [smem:[%s4211_s0 + %s3509_s7]]   ;;  %s3513_s7 = smov 22  }
  0x1d   :  { %s3649_s20 = sld [smem:[%s4211_s0 + %s3510_s15]]   ;;  %s3514_s15 = smov 23  }
  0x1e   :  { %s3654_s27 = sld [smem:[%s4211_s0 + %s3511_s22]]   ;;  %s3515_s22 = smov 24  }
  0x1f   :  { %s3659_s4 = sld [smem:[%s4211_s0 + %s3512_s28]]   ;;  %s3516_s28 = smov 25  }
  0x22   :  { %4240 = sst [smem:[#allocation34_spill]] %s3644_s12 }
  0x23   :  { %4241 = sst [smem:[#allocation35_spill]] %s3649_s20 }
  0x24   :  { %4242 = sst [smem:[#allocation36_spill]] %s3654_s27 }
  0x25   :  { %4243 = sst [smem:[#allocation37_spill]] %s3659_s4 }
  0x26   :  { %s3664_s12 = sld [smem:[%s4211_s0 + %s3513_s7]]   ;;  %s3517_s7 = smov 26  }
  0x27   :  { %s3669_s20 = sld [smem:[%s4211_s0 + %s3514_s15]]   ;;  %s3518_s15 = smov 27  }
  0x28   :  { %s3674_s27 = sld [smem:[%s4211_s0 + %s3515_s22]]  }
  0x29   :  { %s3679_s4 = sld [smem:[%s4211_s0 + %s3516_s28]]  }
  0x2a   :  { %s3684_s16 = sld [smem:[%s4211_s0 + %s3517_s7]]  }
  0x2b   :  { %s3689_s22 = sld [smem:[%s4211_s0 + %s3518_s15]]   ;;  %s3522_s15 = smov 31  }
  0x2c   :  { %4244 = sst [smem:[#allocation38_spill]] %s3664_s12 }
  0x2d   :  { %4245 = sst [smem:[#allocation39_spill]] %s3669_s20 }
  0x2e   :  { %4246 = sst [smem:[#allocation40_spill]] %s3674_s27  ;;  %s3172_s27 = scalar_lea.hbm %s3554_s5, 32 }
  0x2f   :  { %4247 = sst [smem:[#allocation41_spill]] %s3679_s4  ;;  %s3524_s4 = smov 33  }
  0x30   :  { %4248 = sst [smem:[#allocation42_spill]] %s3684_s16  ;;  %p3173_p0 = scmp.ne.s32.totalorder %s3554_s5, %s3172_s27 }
  0x31   :  { %4249 = sst [smem:[#allocation43_spill]] %s3689_s22  ;;  %p3176_p1 = scmp.lt.u32.totalorder %s3172_s27, %s3554_s5 }
  0x32   :  { %s3694_s28 = sld [smem:[%s4211_s0 + %s3519_s23]]   ;;  %s3523_s23 = smov 32  }
  0x33   :  { %s3699_s7 = sld [smem:[%s4211_s0 + %s3520_s2]]   ;;  %p3178_p2 = pnand %p3176_p1, %p3173_p0 }
  0x34   :  { %s3704_s20 = sld [smem:[%s4211_s0 + %s3521_s11]]  }
  0x35   :  { %s3709_s12 = sld [smem:[%s4211_s0 + %s3522_s15]]  }
  0x38   :  { %4250 = sst [smem:[#allocation44_spill]] %s3694_s28 }
  0x39   :  { %4251 = sst [smem:[#allocation45_spill]] %s3699_s7 }
  0x3a   :  { %s3714_s28 = sld [smem:[%s4211_s0 + %s3523_s23]]  }
  0x3b   :  { %s3719_s7 = sld [smem:[%s4211_s0 + %s3524_s4]]  }
  0x41   :  { %4252 = sst [smem:[#allocation46_spill]] %s3719_s7 }
  0x42   :  { %3181 = shalt.err (!%p3178_p2)  }
  0x43   :  { %s3525_s16 = smov [#allocation3]  }
  0x44   :  { %74 = dma.hbm_to_smem %s3554_s5, 32, %s3525_s16, [#allocation2] }
  0x45   :  { %3450 = dma.done.wait [#allocation2], 32 }
  0x46   :  { %3451 = vsyncadd [#allocation2], 4294967264 }
  0x47   :  { %76 = sfence }
  0x48   :  { %77 = vsyncpa [#allocation5], 0 }
  0x49   :  { %78 = vsyncpa [#allocation8], 0 }
  0x4a   :  { %79 = vsyncpa [#allocation11], 0 }
  0x4b   :  { %80 = vsyncpa [#allocation14], 0 }
  0x4c   :  { %81 = vsyncpa [#allocation6], 0 }
  0x4d   :  { %83 = vsyncpa [#allocation6 + $0x1], 0 }
  0x4e   :  { %84 = vsyncpa [#allocation18], 0 }
  0x4f   :  { %86 = vsyncpa [#allocation18 + $0x1], 0  ;;  %s3725_s0 = smov 0   ;;  %s3727_s22 = smov 0  }
  0x50   :  { %s3729_s11 = smov 0   ;;  %s3731_s15 = smov 0  }
  0x51 LB: > { %s4253_s7 = sld [smem:[#allocation46_spill]]  ;;  %s4254_s6 = sld [smem:[#allocation29_spill]]  ;;  %s3478_s0 = sphi %s3725_s0, %s4305_s0   ;;  %s3490_s15 = sphi %s3731_s15, %s4302_s15   ;;  %s3486_s11 = sphi %s3729_s11, %s4304_s11   ;;  %s3482_s22 = sphi %s3727_s22, %s4306_s22  }
  0x52   : > { %s4255_s3 = sld [smem:[#allocation27_spill]]  ;;  %s4256_s25 = sld [smem:[#allocation26_spill]] }
  0x53   : > { %s4257_s8 = sld [smem:[#allocation28_spill]]  ;;  %4258 = sst [smem:[#allocation47_spill]] %s3486_s11 }
  0x54   : > { %s3746_s5 = sadd.s32 4294967295, %s3490_s15   ;;  %s2679_s18 = sadd.s32 4294967294, %s3490_s15  }
  0x55   : > { %s3750_s23 = sadd.s32 1, %s3490_s15   ;;  %s755_s26 = sadd.s32 1, %s3486_s11 }
  0x56   : > { %4259 = sst [smem:[#allocation48_spill]] %s3750_s23  ;;  %s752_s1 = ssub.s32 %s3490_s15, %s3750_s23 }
  0x57   : > { %p765_p3 = scmp.ne.s32.totalorder %s3486_s11, %s3482_s22  ;;  %p753_p4 = scmp.eq.s32.totalorder %s752_s1, 0 }
  0x58   : > { %p766_p5 = scmp.eq.s32.totalorder %s3746_s5, 1  ;;  %p771_p6 = scmp.ne.s32.totalorder %s3482_s22, %s3478_s0 }
  0x59   : > { %p772_p7 = scmp.eq.s32.totalorder %s2679_s18, 1  ;;  %p2680_p10 = scmp.ge.s32.totalorder %s3490_s15, 1 }
  0x5a   : > { %s3761_s4 = scalar_select %p753_p4, %s3486_s11, %s755_s26  }
  0x5b   : > { %p3763_p8 = por %p766_p5, %p765_p3  ;;  %p3767_p9 = por %p772_p7, %p771_p6 }
  0x5c   : > { %4260 = sst [smem:[#allocation49_spill]] %s3761_s4  ;;  %p805_p11 = scmp.lt.s32.totalorder %s3490_s15, 3 }
  0x5d   : > { %s4261_s2 = scalar_select %p3763_p8, 1, 0 }
  0x5e   : > { %s4262_s10 = scalar_select %p3767_p9, 1, 0 }
  0x5f   : > { %p4221_p12 = scmp.eq.s32.totalorder %s3746_s5, 0  ;;  %p3774_p13 = pnand %p2680_p10, %p805_p11 }
  0x60   : > { %4263 = sst [smem:[#allocation50_spill]] %s4262_s10  ;;  %s3526_s16 = smov [#allocation7]  }
  0x61   : > { %s4264_s27 = scalar_select %p3774_p13, 1, 0 }
  0x62   : > { %s835_s18 = sshll.u32 %s3526_s16, 4  ;;  %p2972_p0 = pneg %p3774_p13  ;;  %s836_s18 = int_to_ptr.vmem [resolvable:$true] %s835_s18 }
  0x63   : > { %s3527_s26 = smov [#allocation10]   ;;  %s3528_s11 = smov [#allocation13]  }
  0x64   : > { %s860_s1 = sshll.u32 %s3527_s26, 4  ;;  %p3782_p1 = pnand %p4221_p12, %p2972_p0  ;;  %s3786_s1 = int_to_ptr.vmem [resolvable:$true] %s860_s1 }
  0x65   : > { %s885_s23 = sshll.u32 %s3528_s11, 4  ;;  %s3182_s10 = scalar_lea.hbm %s4256_s25, 16  ;;  %s3788_s23 = int_to_ptr.vmem [resolvable:$true] %s885_s23 }
  0x66   : > { %p3183_p2 = scmp.ne.s32.totalorder %s4256_s25, %s3182_s10  ;;  %p3794_p3 = pneg %p3782_p1 }
  0x67   : > { %p3189_p6 = scmp.lt.u32.totalorder %s3182_s10, %s4256_s25 }
  0x68   : > { %p3185_p4 = pnand %p3794_p3, %p3183_p2 }
  0x6a   : > { %p3186_p5 = pneg %p3185_p4 }
  0x6c   : > { %p3191_p7 = pnand %p3189_p6, %p3186_p5 }
  0x6e   : > { %3194 = shalt.err (!%p3191_p7)
}
  0x6f   : > { %s3195_s26 = scalar_lea.vmem %s836_s18, 16  ;;  %s3202_s11 = scalar_lea.vmem %s836_s18, 32 }
  0x70   : > { %p3196_p10 = scmp.ne.s32.totalorder %s836_s18, %s3195_s26  ;;  %p3203_p12 = scmp.lt.s32.totalorder %s836_s18, %s836_s18 }
  0x71   : > { %p3204_p9 = scmp.lt.s32.totalorder %s3202_s11, %s3195_s26 }
  0x72   : > { %p3198_p11 = pnand %p3196_p10, %p3794_p3 }
  0x73   : > { %p3205_p8 = por %p3204_p9, %p3203_p12 }
  0x74   : > { %p3199_p0 = pneg %p3198_p11 }
  0x76   : > { %p3206_p13 = pnand %p3205_p8, %p3199_p0 }
  0x78   : > { %3209 = shalt.err (!%p3206_p13)
}
  0x79   : > { %2978 = dma.hbm_to_vmem [thread:$0]  (!%p3782_p1), %s4256_s25, 16, %s836_s18, [#allocation8]  }
  0x7a   : > { %s3210_s10 = scalar_lea.hbm %s4257_s8, 16 }
  0x7b   : > { %p3211_p2 = scmp.ne.s32.totalorder %s4257_s8, %s3210_s10  ;;  %p3217_p6 = scmp.lt.u32.totalorder %s3210_s10, %s4257_s8 }
  0x7d   : > { %p3213_p4 = pnand %p3211_p2, %p3794_p3 }
  0x7f   : > { %p3214_p5 = pneg %p3213_p4 }
  0x81   : > { %p3219_p7 = pnand %p3217_p6, %p3214_p5 }
  0x83   : > { %3222 = shalt.err (!%p3219_p7)
}
  0x84   : > { %s3223_s26 = scalar_lea.vmem %s3786_s1, 16  ;;  %s3230_s11 = scalar_lea.vmem %s3786_s1, 32 }
  0x85   : > { %p3224_p8 = scmp.ne.s32.totalorder %s3786_s1, %s3223_s26  ;;  %p3231_p13 = scmp.lt.s32.totalorder %s3786_s1, %s3786_s1 }
  0x86   : > { %p3232_p10 = scmp.lt.s32.totalorder %s3230_s11, %s3223_s26 }
  0x87   : > { %p3226_p9 = pnand %p3224_p8, %p3794_p3 }
  0x88   : > { %p3233_p11 = por %p3232_p10, %p3231_p13 }
  0x89   : > { %p3227_p12 = pneg %p3226_p9 }
  0x8b   : > { %p3234_p0 = pnand %p3233_p11, %p3227_p12 }
  0x8d   : > { %3237 = shalt.err (!%p3234_p0)
}
  0x8e   : > { %2984 = dma.hbm_to_vmem [thread:$0]  (!%p3782_p1), %s4257_s8, 16, %s3786_s1, [#allocation11]  }
  0x8f   : > { %s3238_s18 = scalar_lea.hbm %s3609_s24, 16 }
  0x90   : > { %p3239_p2 = scmp.ne.s32.totalorder %s3609_s24, %s3238_s18  ;;  %p3245_p6 = scmp.lt.u32.totalorder %s3238_s18, %s3609_s24 }
  0x92   : > { %p3241_p4 = pnand %p3239_p2, %p3794_p3 }
  0x94   : > { %p3242_p5 = pneg %p3241_p4 }
  0x96   : > { %p3247_p7 = pnand %p3245_p6, %p3242_p5 }
  0x98   : > { %3250 = shalt.err (!%p3247_p7)
}
  0x99   : > { %s3251_s10 = scalar_lea.vmem %s3788_s23, 16  ;;  %s3258_s26 = scalar_lea.vmem %s3788_s23, 32 }
  0x9a   : > { %p3252_p8 = scmp.ne.s32.totalorder %s3788_s23, %s3251_s10  ;;  %p3259_p13 = scmp.lt.s32.totalorder %s3788_s23, %s3788_s23 }
  0x9b   : > { %p3260_p10 = scmp.lt.s32.totalorder %s3258_s26, %s3251_s10 }
  0x9c   : > { %p3254_p9 = pnand %p3252_p8, %p3794_p3 }
  0x9d   : > { %p3261_p11 = por %p3260_p10, %p3259_p13 }
  0x9e   : > { %p3255_p12 = pneg %p3254_p9 }
  0xa0   : > { %p3262_p0 = pnand %p3261_p11, %p3255_p12 }
  0xa2   : > { %3265 = shalt.err (!%p3262_p0)
}
  0xa3   : > { %2990 = dma.hbm_to_vmem [thread:$0]  (!%p3782_p1), %s3609_s24, 16, %s3788_s23, [#allocation14]  }
  0xa4   : > { %s3529_s1 = smov [#allocation4]   ;;  %s3530_s18 = smov [#allocation9]  }
  0xa5   : > { %s821_s11 = sshll.u32 %s3529_s1, 4  ;;  %s849_s8 = sshll.u32 %s3530_s18, 4  ;;  %s822_s11 = int_to_ptr.vmem [resolvable:$true] %s821_s11  ;;  %s850_s8 = int_to_ptr.vmem [resolvable:$true] %s849_s8 }
  0xa6   : > { %s3266_s25 = scalar_lea.hbm %s3569_s17, 16 }
  0xa7   : > { %p3267_p2 = scmp.ne.s32.totalorder %s3569_s17, %s3266_s25  ;;  %p3273_p6 = scmp.lt.u32.totalorder %s3266_s25, %s3569_s17 }
  0xa9   : > { %p3269_p4 = pnand %p3267_p2, %p3794_p3 }
  0xab   : > { %p3270_p5 = pneg %p3269_p4 }
  0xad   : > { %p3275_p7 = pnand %p3273_p6, %p3270_p5 }
  0xaf   : > { %3278 = shalt.err (!%p3275_p7)
}
  0xb0   : > { %s3279_s10 = scalar_lea.vmem %s822_s11, 16  ;;  %s3286_s23 = scalar_lea.vmem %s822_s11, 32 }
  0xb1   : > { %p3280_p8 = scmp.ne.s32.totalorder %s822_s11, %s3279_s10  ;;  %p3287_p13 = scmp.lt.s32.totalorder %s822_s11, %s822_s11 }
  0xb2   : > { %p3288_p10 = scmp.lt.s32.totalorder %s3286_s23, %s3279_s10 }
  0xb3   : > { %p3282_p9 = pnand %p3280_p8, %p3794_p3 }
  0xb4   : > { %p3289_p11 = por %p3288_p10, %p3287_p13 }
  0xb5   : > { %p3283_p12 = pneg %p3282_p9 }
  0xb7   : > { %p3290_p0 = pnand %p3289_p11, %p3283_p12 }
  0xb9   : > { %3293 = shalt.err (!%p3290_p0)
}
  0xba   : > { %2975 = dma.hbm_to_vmem [thread:$0]  (!%p3782_p1), %s3569_s17, 16, %s822_s11, [#allocation5]  }
  0xbb   : > { %s3294_s25 = scalar_lea.hbm %s4255_s3, 16 }
  0xbc   : > { %p3295_p2 = scmp.ne.s32.totalorder %s4255_s3, %s3294_s25  ;;  %p3301_p6 = scmp.lt.u32.totalorder %s3294_s25, %s4255_s3 }
  0xbe   : > { %p3297_p4 = pnand %p3295_p2, %p3794_p3 }
  0xc0   : > { %p3298_p5 = pneg %p3297_p4 }
  0xc2   : > { %p3303_p7 = pnand %p3301_p6, %p3298_p5 }
  0xc4   : > { %3306 = shalt.err (!%p3303_p7)
}
  0xc5   : > { %s3307_s26 = scalar_lea.vmem %s850_s8, 16  ;;  %s3314_s1 = scalar_lea.vmem %s850_s8, 32 }
  0xc6   : > { %p3308_p8 = scmp.ne.s32.totalorder %s850_s8, %s3307_s26  ;;  %p3315_p13 = scmp.lt.s32.totalorder %s850_s8, %s850_s8 }
  0xc7   : > { %p3316_p10 = scmp.lt.s32.totalorder %s3314_s1, %s3307_s26 }
  0xc8   : > { %p3310_p9 = pnand %p3308_p8, %p3794_p3 }
  0xc9   : > { %p3317_p11 = por %p3316_p10, %p3315_p13 }
  0xca   : > { %p3311_p12 = pneg %p3310_p9 }
  0xcc   : > { %p3318_p0 = pnand %p3317_p11, %p3311_p12 }
  0xce   : > { %3321 = shalt.err (!%p3318_p0)
}
  0xcf   : > { %2981 = dma.hbm_to_vmem [thread:$0]  (!%p3782_p1), %s4255_s3, 16, %s850_s8, [#allocation8]  }
  0xd0   : > { %s3531_s11 = smov [#allocation12]   ;;  %s3532_s10 = smov [#allocation15]  }
  0xd1   : > { %s871_s18 = sshll.u32 %s3531_s11, 4  ;;  %s899_s23 = sshll.u32 %s3532_s10, 4  ;;  %s872_s18 = int_to_ptr.vmem [resolvable:$true] %s871_s18  ;;  %s900_s23 = int_to_ptr.vmem [resolvable:$true] %s899_s23 }
  0xd2   : > { %s3322_s25 = scalar_lea.hbm %s3599_s14, 16 }
  0xd3   : > { %p3323_p2 = scmp.ne.s32.totalorder %s3599_s14, %s3322_s25  ;;  %p3329_p6 = scmp.lt.u32.totalorder %s3322_s25, %s3599_s14 }
  0xd5   : > { %p3325_p4 = pnand %p3323_p2, %p3794_p3 }
  0xd7   : > { %p3326_p5 = pneg %p3325_p4 }
  0xd9   : > { %p3331_p7 = pnand %p3329_p6, %p3326_p5 }
  0xdb   : > { %3334 = shalt.err (!%p3331_p7)
}
  0xdc   : > { %s3335_s26 = scalar_lea.vmem %s872_s18, 16  ;;  %s3342_s8 = scalar_lea.vmem %s872_s18, 32 }
  0xdd   : > { %p3336_p8 = scmp.ne.s32.totalorder %s872_s18, %s3335_s26  ;;  %p3343_p13 = scmp.lt.s32.totalorder %s872_s18, %s872_s18 }
  0xde   : > { %p3344_p10 = scmp.lt.s32.totalorder %s3342_s8, %s3335_s26 }
  0xdf   : > { %p3338_p9 = pnand %p3336_p8, %p3794_p3 }
  0xe0   : > { %p3345_p11 = por %p3344_p10, %p3343_p13 }
  0xe1   : > { %p3339_p12 = pneg %p3338_p9 }
  0xe3   : > { %p3346_p0 = pnand %p3345_p11, %p3339_p12 }
  0xe5   : > { %3349 = shalt.err (!%p3346_p0)
}
  0xe6   : > { %2987 = dma.hbm_to_vmem [thread:$0]  (!%p3782_p1), %s3599_s14, 16, %s872_s18, [#allocation11]  }
  0xe7   : > { %s3350_s1 = scalar_lea.hbm %s4254_s6, 16 }
  0xe8   : > { %p3351_p2 = scmp.ne.s32.totalorder %s4254_s6, %s3350_s1  ;;  %p3357_p6 = scmp.lt.u32.totalorder %s3350_s1, %s4254_s6 }
  0xea   : > { %p3353_p4 = pnand %p3351_p2, %p3794_p3 }
  0xec   : > { %p3354_p5 = pneg %p3353_p4 }
  0xee   : > { %p3359_p7 = pnand %p3357_p6, %p3354_p5 }
  0xf0   : > { %3362 = shalt.err (!%p3359_p7)
}
  0xf1   : > { %s3363_s11 = scalar_lea.vmem %s900_s23, 16  ;;  %s3370_s10 = scalar_lea.vmem %s900_s23, 32 }
  0xf2   : > { %p3364_p8 = scmp.ne.s32.totalorder %s900_s23, %s3363_s11  ;;  %p3371_p13 = scmp.lt.s32.totalorder %s900_s23, %s900_s23 }
  0xf3   : > { %p3372_p10 = scmp.lt.s32.totalorder %s3370_s10, %s3363_s11 }
  0xf4   : > { %p3366_p9 = pnand %p3364_p8, %p3794_p3 }
  0xf5   : > { %p3373_p11 = por %p3372_p10, %p3371_p13 }
  0xf6   : > { %p3367_p12 = pneg %p3366_p9 }
  0xf8   : > { %p3374_p0 = pnand %p3373_p11, %p3367_p12 }
  0xfa   : > { %3377 = shalt.err (!%p3374_p0)
}
  0xfb   : > { %2993 = dma.hbm_to_vmem [thread:$0]  (!%p3782_p1), %s4254_s6, 16, %s900_s23, [#allocation14]  }
  0xfc   : > { %p4267_p2 = scmp.ne.s32.totalorder %s4264_s27, 0 }
  0xfd   : > { %p4268_p4 = scmp.eq.s32.totalorder (!%p4267_p2), %s3746_s5, 0 }
  0xfe   : > { %973 = sbr.rel (%p4267_p2) target bundleno = 5108 (0x13f4), region = 144 }
 0x105   : > { %3453 = dma.done.wait (%p4268_p4), [#allocation5], 16   ;;  %p4269_p5 = pmov %p4268_p4 }
 0x106   : > { %p4270_p3 = pmov %p4268_p4 }
 0x107   : > { %3455 = vsyncadd (%p4269_p5), [#allocation5], 4294967280 }
 0x108   : > { %3457 = dma.done.wait (%p4270_p3), [#allocation8], 32   ;;  %p4271_p6 = pmov %p4270_p3 }
 0x109   : > { %p4272_p7 = pmov %p4270_p3 }
 0x10a   : > { %3459 = vsyncadd (%p4271_p6), [#allocation8], 4294967264 }
 0x10b   : > { %3461 = dma.done.wait (%p4272_p7), [#allocation11], 32   ;;  %p4273_p1 = pmov %p4270_p3 }
 0x10d   : > { %3463 = vsyncadd (%p4273_p1), [#allocation11], 4294967264  ;;  %p4274_p8 = pmov %p4273_p1 }
 0x10e   : > { %p4275_p9 = pmov %p4273_p1 }
 0x10f   : > { %3465 = dma.done.wait (%p4274_p8), [#allocation14], 32  }
 0x110   : > { %3467 = vsyncadd (%p4275_p9), [#allocation14], 4294967264  ;;  %p1083_p12 = scmp.lt.s32.totalorder %s3746_s5, 1  ;;  %vm1097_vm0 = vcmask 261120   ;;  %v3100_v7 = vld [vmem:[%s3574_s21] sm:$0xff]   ;;  %v3533_v8 = vmov 0.0  }
 0x111   : > { %2820 = vmatprep.subr.bf16.mxu1 %v3533_v8  ;;  %vm3534_vm1 = vmmov 0   ;;  %v3101_v9 = vld [vmem:[%s3574_s21 + $0x8] sm:$0xff]   ;;  %2840 = vmatprep.subr.bf16.mxu0 %v3533_v8  ;;  %v2701_v14 = vld [vmem:[%s3564_s13] ss:$0 sm:$0xff]  ;;  %v3104_v22 = vld [vmem:[%s3584_s29 + $0x10] sm:$0xff]   ;;  %vm1240_vm2 = vcmask 523264  }
 0x112   : > { %s1084_s4 = scalar_select %p1083_p12, %s3746_s5, 1  ;;  %2824 = vmatprep.mubr.msk.bf16.mxu1 %vm3534_vm1, %v3533_v8  ;;  %2821 = vmatpush3.bf16.msra.mxu1 %v3100_v7  ;;  %v2702_v16 = vld [vmem:[#allocation4] ss:$0 sm:$0xff]  ;;  %v3103_v21 = vld [vmem:[%s3584_s29 + $0x8] sm:$0xff]   ;;  %v3105_v23 = vld [vmem:[%s3584_s29 + $0x18] sm:$0xff]   ;;  %vm1413_vm3 = vcmask 64512  }
 0x113   : > { %2822 = vmatprep.subr.bf16.mxu1 %v3533_v8  ;;  %2844 = vmatprep.mubr.msk.bf16.mxu0 %vm3534_vm1, %v3533_v8  ;;  %v3102_v20 = vld [vmem:[%s3584_s29] sm:$0xff]   ;;  %v3107_v51 = vld [vmem:[%s3604_s19 + $0x8] sm:$0xff]   ;;  %s3535_s18 = smov 112   ;;  %s3536_s23 = smov 120   ;;  %vm1687_vm5 = vcmask 1043456   ;;  %vm1904_vm6 = vcmask 130048  }
 0x114   : > { %s2699_s27 = sshll.u32 %s1084_s4, 3  ;;  %v2703_v24 = vld [vmem:[#allocation7] ss:$0 sm:$0xff]  ;;  %v2708_v36 = vld [vmem:[#allocation9] ss:$0 sm:$0xff]  ;;  %s3537_s25 = smov 104  }
 0x115   : > { %s1086_s16 = scalar_lea.vmem %s3559_s9, %s2699_s27  ;;  %v3106_v50 = vld [vmem:[%s3604_s19] sm:$0xff]   ;;  %v2715_v58 = vld [vmem:[#allocation12] ss:$0 sm:$0xff]  ;;  %v2716_v62 = vld [vmem:[#allocation13] ss:$0 sm:$0xff]  ;;  %s3538_s26 = smov 96  }
 0x116   : > { %v3899_v0 = vld [vmem:[%s1086_s16] sm:$0xff]  ;;  %2823 = vmatpush3.bf16.msra.mxu1 %v3101_v9  ;;  %2841 = vmatpush3.bf16.msra.mxu0 %v3106_v50  ;;  %s3984_s8 = sshll.u32 %s3746_s5, 7  ;;  %s4226_s5 = smov 64   ;;  %vm1906_vm7 = vcmask 195584   ;;  %vm1391_vm11 = vcmask 257024  }
 0x117   : > { %v1098_v1 = vsel %vm1097_vm0, %v3899_v0, 0.0  ;;  %2828 = vmatprep.subr.bf16.mxu1 %v3533_v8  ;;  %2842 = vmatprep.subr.bf16.mxu0 %v3533_v8  ;;  %v2714_v56 = vld [vmem:[#allocation10] ss:$0 sm:$0xff]  ;;  %s1090_s1 = sld [smem:[#allocation3 + %s3984_s8]]  ;;  %s3540_s11 = smov 8  }
 0x118   : > { %1099 = vadd.xlane.f32.xlu0 %v1098_v1  ;;  %s3541_s10 = smov 16   ;;  %s3542_s4 = smov 24  }
 0x119   : > { %s4278_s27 = sld [smem:[#allocation32_spill]]  ;;  %s4279_s16 = sld [smem:[#allocation30_spill]] }
 0x11a   : > { %2843 = vmatpush3.bf16.msra.mxu0 %v3107_v51  ;;  %p4297_p10 = scmp.ne.s32.totalorder %s4261_s2, 0 }
 0x11b   : > { %2848 = vmatprep.subr.bf16.mxu0 %v3533_v8 }
 0x1a5   : > { %v1100_v2 = vpop.xlane.xlu0 %1099 }
 0x1a6   : > { %v1102_v3 = vmul.f32 0.03125, %v1100_v2 }
 0x1a8   : > { %v1103_v4 = vsub.f32 %v3899_v0, %v1102_v3 }
 0x1aa   : > { %v1104_v5 = vmul.f32 %v1103_v4, %v1103_v4 }
 0x1ac   : > { %v1105_v6 = vsel %vm1097_vm0, %v1104_v5, 0.0 }
 0x1ad   : > { %1106 = vadd.xlane.f32.xlu0 %v1105_v6 }
 0x23a   : > { %v1107_v10 = vpop.xlane.xlu0 %1106 }
 0x23b   : > { %v1108_v11 = vmul.f32 0.03125, %v1107_v10 }
 0x23d   : > { %v1109_v12 = vadd.f32 1e-12, %v1108_v11 }
 0x23f   : > { %3120 = vrsqrt.f32 %v1109_v12 }
 0x249   : > { %v3121_v13 = vpop.eup %3120 }
 0x24a   : > { %v1111_v15 = vmul.f32 %v3121_v13, %v1103_v4 }
 0x24c   : > { %v1118_v17 = vmul.f32 %v2701_v14, %v1111_v15 }
 0x24e   : > { %v1125_v18 = vadd.f32 %v2702_v16, %v1118_v17 }
 0x250   : > { %v1130_v19 = vpack.c.bf16 %v1125_v18, %v1125_v18 }
 0x252   : > { %2825 = vmatmul.mubr.msk.bf16.vlgmr.msra.gmra.mrb[0].mxu1 %vm1097_vm0, %v1130_v19 }
 0x253   : > { %2836 = vmatprep.mubr.msk.bf16.mxu1 %vm3534_vm1, %v3533_v8  ;;  %2829 = vmatpush3.bf16.msra.mxu1 %v3102_v20 }
 0x254   : > { %2830 = vmatprep.subr.bf16.mxu1 %v3533_v8 }
 0x257   : > { %2831 = vmatpush3.bf16.msra.mxu1 %v3103_v21 }
 0x258   : > { %2832 = vmatprep.subr.bf16.mxu1 %v3533_v8 }
 0x25b   : > { %2833 = vmatpush3.bf16.msra.mxu1 %v3104_v22  ;;  %v1093_v22 = vlaneseq }
 0x25c   : > { %2834 = vmatprep.subr.bf16.mxu1 %v3533_v8 }
 0x25f   : > { %2835 = vmatpush3.bf16.msra.mxu1 %v3105_v23  ;;  %v1605_v23 = vand.u32 127, %v1093_v22 }
 0x260   : > { %2854 = vmatprep.subr.bf16.mxu1 %v3533_v8 }
 0x325   : > { %v1187_v25 = vpop.f32.mrb[0].mxu1 }
 0x326   : > { %v1188_v26 = vadd.f32 %v2703_v24, %v1187_v25  ;;  %v2826_v27 = vpop.f32.mrb[1].mxu1  ;;  %v1606_v24 = vstv %s1090_s1 }
 0x327   : > { %v1190_v28 = vpop.f32.mrb[2].mxu1  ;;  %vm3988_vm4 = vcmp.lt.s32.totalorder %v1605_v23, %v1606_v24 }
 0x328   : > { %v2707_v29 = vmul.f32 -1.442695, %v1188_v26  ;;  %v2827_v30 = vpop.f32.mrb[3].mxu1 }
 0x32a   : > { %3122 = vpow2.f32 %v2707_v29 }
 0x334   : > { %v3123_v31 = vpop.eup %3122 }
 0x335   : > { %v1196_v32 = vadd.f32 1.0, %v3123_v31 }
 0x337   : > { %3124 = vrcp.f32 %v1196_v32 }
 0x341   : > { %v3125_v33 = vpop.eup %3124 }
 0x342   : > { %v1199_v34 = vmul.f32 %v3125_v33, %v1188_v26 }
 0x344   : > { %v1208_v35 = vpack.c.bf16 %v1199_v34, %v1199_v34 }
 0x346   : > { %2837 = vmatmul.mubr.msk.bf16.vlgmr.msra.gmra.mrb[4].mxu1 %vm1240_vm2, %v1208_v35 }
 0x347   : > { %2856 = vmatprep.mubr.msk.bf16.mxu1 %vm3534_vm1, %v3533_v8 }
 0x419   : > { %v1278_v37 = vpop.f32.mrb[4].mxu1 }
 0x41a   : > { %v1279_v38 = vadd.f32 %v2708_v36, %v1278_v37  ;;  %v2838_v39 = vpop.f32.mrb[5].mxu1 }
 0x41b   : > { %v1281_v40 = vpop.f32.mrb[6].mxu1 }
 0x41c   : > { %v1284_v41 = vmul.f32 0.5, %v1279_v38  ;;  %v2839_v42 = vpop.f32.mrb[7].mxu1 }
 0x41e   : > { %v3931_v43 = vadd.f32 %v1284_v41, %v3899_v0 }
 0x420   : > { %v1288_v44 = vsel %vm1097_vm0, %v3931_v43, 0.0 }
 0x421   : > { %1289 = vadd.xlane.f32.xlu1 %v1288_v44 }
 0x4ae   : > { %v1290_v45 = vpop.xlane.xlu1 %1289 }
 0x4af   : > { %v1291_v46 = vmul.f32 0.03125, %v1290_v45 }
 0x4b1   : > { %v1292_v47 = vsub.f32 %v3931_v43, %v1291_v46 }
 0x4b3   : > { %v1293_v48 = vmul.f32 %v1292_v47, %v1292_v47 }
 0x4b5   : > { %v1294_v49 = vsel %vm1097_vm0, %v1293_v48, 0.0 }
 0x4b6   : > { %1295 = vadd.xlane.f32.xlu1 %v1294_v49 }
 0x543   : > { %v1296_v52 = vpop.xlane.xlu1 %1295 }
 0x544   : > { %v1297_v53 = vmul.f32 0.03125, %v1296_v52 }
 0x546   : > { %v1298_v54 = vadd.f32 1e-12, %v1297_v53 }
 0x548   : > { %3126 = vrsqrt.f32 %v1298_v54 }
 0x552   : > { %v3127_v55 = vpop.eup %3126 }
 0x553   : > { %v1300_v57 = vmul.f32 %v3127_v55, %v1292_v47 }
 0x555   : > { %v1307_v59 = vmul.f32 %v2714_v56, %v1300_v57 }
 0x557   : > { %v1314_v60 = vadd.f32 %v2715_v58, %v1307_v59 }
 0x559   : > { %v1319_v61 = vpack.c.bf16 %v1314_v60, %v1314_v60 }
 0x55b   : > { %2845 = vmatmul.mubr.msk.bf16.vlgmr.msra.gmra.mrb[0].mxu0 %vm1097_vm0, %v1319_v61 }
 0x55c   : > { %2850 = vmatprep.mubr.msk.bf16.mxu0 %vm3534_vm1, %v3533_v8 }
 0x62e   : > { %v1376_v63 = vpop.f32.mrb[0].mxu0 }
 0x62f   : > { %v1377_v0 = vadd.f32 %v2716_v62, %v1376_v63  ;;  %v2846_v1 = vpop.f32.mrb[1].mxu0 }
 0x630   : > { %v1379_v2 = vpop.f32.mrb[2].mxu0 }
 0x631   : > { %v3944_v3 = vpack.c.bf16 %v1377_v0, %v1377_v0  ;;  %v2847_v4 = vpop.f32.mrb[3].mxu0  ;;  %v1382_v5 = vmul.f32 0.35355338, %v1377_v0 }
 0x633   : > { %1407 = vrot.lane.b32.xlu1 %v3944_v3, %s3535_s18  ;;  %1405 = vrot.lane.b32.xlu0 %v3944_v3, %s3536_s23  ;;  %v1383_v9 = vpack.c.bf16 %v1382_v5, %v1382_v5 }
 0x637   : > { %1409 = vrot.lane.b32.xlu1 %v3944_v3, %s3537_s25 }
 0x63b   : > { %1411 = vrot.lane.b32.xlu1 %v3944_v3, %s3538_s26 }
 0x6a5   : > { %v3951_v6 = vpop.permute.xlu1 %1407  ;;  %v3953_v7 = vpop.permute.xlu0 %1405 }
 0x6a6   : > { %1508 = vrot.lane.b32.xlu1 %v3951_v6, %s3538_s26  ;;  %1460 = vrot.lane.b32.xlu0 %v3953_v7, %s3538_s26 }
 0x6a9   : > { %v3959_v10 = vpop.permute.xlu1 %1409 }
 0x6aa   : > { %1556 = vrot.lane.b32.xlu1 %v3959_v10, %s3538_s26  ;;  %1399 = vrot.lane.b32.xlu0 %v1383_v9, %s3536_s23  ;;  %s4281_s23 = sld [smem:[#allocation33_spill]] }
 0x6ad   : > { %v1412_v11 = vpop.permute.xlu1 %1411 }
 0x6ae   : > { %v1418_v12 = vsel %vm1413_vm3, %v1412_v11, 0  ;;  %1403 = vrot.lane.b32.xlu1 %v1383_v9, %s3537_s25  ;;  %1401 = vrot.lane.b32.xlu0 %v1383_v9, %s3535_s18  ;;  %s4280_s18 = sld [smem:[#allocation31_spill]]  ;;  %s1091_s25 = sadd.s32 1, %s3984_s8 }
 0x6af   : > { %2849 = vmatpush3.bf16.xpose.msra.mxu0 %v1418_v12  ;;  %s1092_s1 = sld [smem:[#allocation3 + %s1091_s25]] }
 0x6b0   : > { %2860 = vmatprep.subr.bf16.mxu0 %v3533_v8  ;;  %s4290_s25 = sld [smem:[#allocation39_spill]] }
 0x6b6   : > { %2851 = vmatmul.mubr.msk.bf16.vlgmr.msra.gmra.mrb[4].mxu0 %vm1413_vm3, %v1383_v9 }
 0x6b7   : > { %2862 = vmatprep.mubr.msk.bf16.mxu0 %vm3534_vm1, %v3533_v8 }
 0x718   : > { %v1509_v13 = vpop.permute.xlu1 %1508  ;;  %v1461_v14 = vpop.permute.xlu0 %1460 }
 0x719   : > { %v1514_v15 = vsel %vm1413_vm3, %v1509_v13, 0  ;;  %v1466_v16 = vsel %vm1413_vm3, %v1461_v14, 0 }
 0x71a   : > { %2855 = vmatpush3.bf16.xpose.msra.mxu1 %v1466_v16  ;;  %2861 = vmatpush3.bf16.xpose.msra.mxu0 %v1514_v15 }
 0x71b   : > { %2866 = vmatprep.subr.bf16.mxu1 %v3533_v8  ;;  %2872 = vmatprep.subr.bf16.mxu0 %v3533_v8 }
 0x71c   : > { %v1400_v17 = vpop.permute.xlu0 %1399  ;;  %v1557_v18 = vpop.permute.xlu1 %1556 }
 0x71d   : > { %v1562_v20 = vsel %vm1413_vm3, %v1557_v18, 0 }
 0x720   : > { %v1402_v19 = vpop.permute.xlu0 %1401  ;;  %v1404_v21 = vpop.permute.xlu1 %1403 }
 0x721   : > { %2857 = vmatmul.mubr.msk.bf16.vlgmr.msra.gmra.mrb[8].mxu1 %vm1413_vm3, %v1400_v17  ;;  %2863 = vmatmul.mubr.msk.bf16.vlgmr.msra.gmra.mrb[8].mxu0 %vm1413_vm3, %v1402_v19 }
 0x722   : > { %2867 = vmatpush3.bf16.xpose.msra.mxu1 %v1562_v20  ;;  %2868 = vmatprep.mubr.msk.bf16.mxu1 %vm3534_vm1, %v3533_v8 }
 0x723   : > { %2878 = vmatprep.subr.bf16.mxu1 %v3533_v8  ;;  %2874 = vmatprep.mubr.msk.bf16.mxu0 %vm3534_vm1, %v3533_v8 }
 0x729   : > { %2869 = vmatmul.mubr.msk.bf16.vlgmr.msra.gmra.mrb[12].mxu1 %vm1413_vm3, %v1404_v21 }
 0x72a   : > { %2880 = vmatprep.mubr.msk.bf16.mxu1 %vm3534_vm1, %v3533_v8 }
 0x789   : > { %v1454_v26 = vpop.f32.mrb[4].mxu0 }
 0x78a   : > { %v1610_v27 = vsel %vm3988_vm4, %v1454_v26, -1e+30  ;;  %v2852_v28 = vpop.f32.mrb[5].mxu0 }
 0x78b   : > { %v1457_v29 = vpop.f32.mrb[6].mxu0  ;;  %v1614_v30 = vsel %vm1413_vm3, %v1610_v27, -inf }
 0x78c   : > { %1615 = vmax.xlane.f32.xlu0 %v1614_v30  ;;  %v2853_v31 = vpop.f32.mrb[7].mxu0 }
 0x7f4   : > { %v1502_v32 = vpop.f32.mrb[8].mxu1  ;;  %v1550_v33 = vpop.f32.mrb[8].mxu0 }
 0x7f5   : > { %v1611_v34 = vsel %vm3988_vm4, %v1502_v32, -1e+30  ;;  %v1612_v35 = vsel %vm3988_vm4, %v1550_v33, -1e+30  ;;  %v2858_v36 = vpop.f32.mrb[9].mxu1  ;;  %v2864_v37 = vpop.f32.mrb[9].mxu0 }
 0x7f6   : > { %v1505_v38 = vpop.f32.mrb[10].mxu1  ;;  %v1553_v39 = vpop.f32.mrb[10].mxu0  ;;  %v1620_v40 = vsel %vm1413_vm3, %v1612_v35, -inf  ;;  %v1617_v41 = vsel %vm1413_vm3, %v1611_v34, -inf }
 0x7f7   : > { %1621 = vmax.xlane.f32.xlu0 %v1620_v40  ;;  %v2865_v42 = vpop.f32.mrb[11].mxu0  ;;  %1618 = vmax.xlane.f32.xlu1 %v1617_v41  ;;  %v2859_v44 = vpop.f32.mrb[11].mxu1 }
 0x7fc   : > { %v1598_v45 = vpop.f32.mrb[12].mxu1 }
 0x7fd   : > { %v1613_v46 = vsel %vm3988_vm4, %v1598_v45, -1e+30  ;;  %v2870_v47 = vpop.f32.mrb[13].mxu1 }
 0x7fe   : > { %v1601_v48 = vpop.f32.mrb[14].mxu1  ;;  %v1623_v49 = vsel %vm1413_vm3, %v1613_v46, -inf }
 0x7ff   : > { %1624 = vmax.xlane.f32.xlu0 %v1623_v49  ;;  %v2871_v50 = vpop.f32.mrb[15].mxu1 }
 0x808   : > { %1731 = vrot.lane.b32.xlu1 %v3953_v7, %s4226_s5 }
 0x80c   : > { %1779 = vrot.lane.b32.xlu1 %v3951_v6, %s4226_s5 }
 0x810   : > { %1827 = vrot.lane.b32.xlu1 %v3959_v10, %s4226_s5 }
 0x815   : > { %1682 = vrot.lane.b32.xlu0 %v3944_v3, %s4226_s5 }
 0x819   : > { %v4012_v51 = vpop.xlane.xlu0 %1615 }
 0x81a   : > { %v1626_v52 = vmax.f32 %v4012_v51, -1e+30 }
 0x81c   : > { %v1642_v53 = vsub.f32 %v1610_v27, %v1626_v52  ;;  %v1630_v31 = vsub.f32 -1e+30, %v1626_v52 }
 0x81e   : > { %v1646_v54 = vmul.f32 1.442695, %v1642_v53  ;;  %v1634_v32 = vmul.f32 1.442695, %v1630_v31 }
 0x820   : > { %3128 = vpow2.f32 %v1646_v54 }
 0x82a   : > { %v3129_v2 = vpop.eup %3128 }
 0x82b   : > { %v1654_v7 = vsel %vm3988_vm4, %v3129_v2, 0.0 }
 0x82c   : > { %v1678_v12 = vpack.c.bf16 %v1654_v7, %v1654_v7  ;;  %v1662_v30 = vsel %vm1413_vm3, %v1654_v7, 0.0 }
 0x884   : > { %v4017_v55 = vpop.xlane.xlu0 %1621  ;;  %v1619_v56 = vpop.xlane.xlu1 %1618 }
 0x885   : > { %v1628_v57 = vmax.f32 %v4017_v55, -1e+30  ;;  %v1627_v58 = vmax.f32 %v1619_v56, -1e+30 }
 0x887   : > { %v1644_v59 = vsub.f32 %v1612_v35, %v1628_v57  ;;  %v1643_v60 = vsub.f32 %v1611_v34, %v1627_v58  ;;  %v1631_v25 = vsub.f32 -1e+30, %v1627_v58  ;;  %v1632_v33 = vsub.f32 -1e+30, %v1628_v57 }
 0x888   : > { %v1732_v61 = vpop.permute.xlu1 %1731 }
 0x889   : > { %v1650_v62 = vmul.f32 1.442695, %v1644_v59  ;;  %v1648_v63 = vmul.f32 1.442695, %v1643_v60  ;;  %v1737_v0 = vsel %vm1687_vm5, %v1732_v61, 0  ;;  %v3108_v59 = vld [vmem:[%s3614_s30] sm:$0xff]  }
 0x88a   : > { %2879 = vmatpush3.bf16.msra.mxu1 %v1737_v0  ;;  %v1636_v35 = vmul.f32 1.442695, %v1631_v25  ;;  %v1638_v36 = vmul.f32 1.442695, %v1632_v33 }
 0x88b   : > { %3130 = vpow2.f32 %v1650_v62  ;;  %2890 = vmatprep.subr.bf16.mxu1 %v3533_v8 }
 0x88c   : > { %v1625_v1 = vpop.xlane.xlu0 %1624  ;;  %3132 = vpow2.f32 %v1648_v63  ;;  %v1780_v11 = vpop.permute.xlu1 %1779 }
 0x88d   : > { %v1629_v4 = vmax.f32 %v1625_v1, -1e+30  ;;  %v1785_v13 = vsel %vm1687_vm5, %v1780_v11, 0 }
 0x88f   : > { %v1645_v5 = vsub.f32 %v1613_v46, %v1629_v4  ;;  %v1633_v38 = vsub.f32 -1e+30, %v1629_v4  ;;  %v3109_v4 = vld [vmem:[%s3614_s30 + $0x8] sm:$0xff]  }
 0x890   : > { %v1683_v6 = vpop.permute.xlu0 %1682  ;;  %v1828_v18 = vpop.permute.xlu1 %1827 }
 0x891   : > { %v1652_v9 = vmul.f32 1.442695, %v1645_v5  ;;  %v1689_v10 = vsel %vm1687_vm5, %v1683_v6, 0  ;;  %v1833_v24 = vsel %vm1687_vm5, %v1828_v18, 0  ;;  %v1640_v40 = vmul.f32 1.442695, %v1633_v38 }
 0x892   : > { %2873 = vmatpush3.bf16.msra.mxu0 %v1689_v10 }
 0x893   : > { %2884 = vmatprep.subr.bf16.mxu0 %v3533_v8  ;;  %3134 = vpow2.f32 %v1652_v9 }
 0x894   : > { %3136 = vpow2.f32 %v1634_v32 }
 0x895   : > { %2875 = vmatmul.mubr.msk.bf16.vlgmr.msra.gmra.mrb[12].mxu0 %vm1413_vm3, %v1678_v12  ;;  %v3131_v14 = vpop.eup %3130  ;;  %3138 = vpow2.f32 %v1636_v35 }
 0x896   : > { %2885 = vmatpush3.bf16.msra.mxu0 %v1785_v13  ;;  %2886 = vmatprep.mubr.msk.bf16.mxu0 %vm3534_vm1, %v3533_v8  ;;  %v1656_v15 = vsel %vm3988_vm4, %v3131_v14, 0.0  ;;  %v3133_v16 = vpop.eup %3132  ;;  %3140 = vpow2.f32 %v1638_v36  ;;  %v2733_v36 = vld [vmem:[#allocation15] ss:$0 sm:$0xff] }
 0x897   : > { %2896 = vmatprep.subr.bf16.mxu0 %v3533_v8  ;;  %v1668_v17 = vsel %vm1413_vm3, %v1656_v15, 0.0  ;;  %v1655_v19 = vsel %vm3988_vm4, %v3133_v16, 0.0  ;;  %v1680_v23 = vpack.c.bf16 %v1656_v15, %v1656_v15  ;;  %3142 = vpow2.f32 %v1640_v40 }
 0x898   : > { %1669 = vadd.xlane.f32.xlu1 %v1668_v17  ;;  %v1665_v20 = vsel %vm1413_vm3, %v1655_v19, 0.0  ;;  %v1679_v21 = vpack.c.bf16 %v1655_v19, %v1655_v19 }
 0x899   : > { %1666 = vadd.xlane.f32.xlu0 %v1665_v20 }
 0x89a   : > { %2881 = vmatmul.mubr.msk.bf16.vlgmr.msra.gmra.mrb[16].mxu1 %vm1413_vm3, %v1679_v21 }
 0x89b   : > { %2891 = vmatpush3.bf16.msra.mxu1 %v1833_v24  ;;  %2892 = vmatprep.mubr.msk.bf16.mxu1 %vm3534_vm1, %v3533_v8 }
 0x89c   : > { %2904 = vmatprep.subr.bf16.mxu1 %v3533_v8 }
 0x89d   : > { %2887 = vmatmul.mubr.msk.bf16.vlgmr.msra.gmra.mrb[16].mxu0 %vm1413_vm3, %v1680_v23  ;;  %v3135_v26 = vpop.eup %3134 }
 0x89e   : > { %2900 = vmatprep.mubr.msk.bf16.mxu0 %vm3534_vm1, %v3533_v8  ;;  %v1657_v27 = vsel %vm3988_vm4, %v3135_v26, 0.0  ;;  %v3137_v39 = vpop.eup %3136  ;;  %2897 = vmatpush3.bf16.msra.mxu0 %v3108_v59 }
 0x89f   : > { %v1671_v28 = vsel %vm1413_vm3, %v1657_v27, 0.0  ;;  %v1681_v29 = vpack.c.bf16 %v1657_v27, %v1657_v27  ;;  %v1658_v42 = vmul.f32 0.0, %v3137_v39  ;;  %v3139_v45 = vpop.eup %3138  ;;  %2898 = vmatprep.subr.bf16.mxu0 %v3533_v8 }
 0x8a0   : > { %1672 = vadd.xlane.f32.xlu0 %v1671_v28  ;;  %v3141_v46 = vpop.eup %3140  ;;  %v1659_v49 = vmul.f32 0.0, %v3139_v45 }
 0x8a1   : > { %v1660_v50 = vmul.f32 0.0, %v3141_v46  ;;  %v3143_v53 = vpop.eup %3142 }
 0x8a2   : > { %2893 = vmatmul.mubr.msk.bf16.vlgmr.msra.gmra.mrb[20].mxu1 %vm1413_vm3, %v1681_v29  ;;  %v1661_v56 = vmul.f32 0.0, %v3143_v53  ;;  %2899 = vmatpush3.bf16.msra.mxu0 %v3109_v4 }
 0x8a3   : > { %2908 = vmatprep.mubr.msk.bf16.mxu1 %vm3534_vm1, %v3533_v8  ;;  %2912 = vmatprep.subr.bf16.mxu0 %v3533_v8 }
 0x8a4   : > { %1663 = vadd.xlane.f32.xlu0 %v1662_v30 }
 0x925   : > { %v1670_v48 = vpop.xlane.xlu1 %1669 }
 0x926   : > { %v1667_v34 = vpop.xlane.xlu0 %1666  ;;  %v1676_v52 = vadd.f32 %v1670_v48, %v1660_v50 }
 0x927   : > { %v1675_v51 = vadd.f32 %v1667_v34, %v1659_v49 }
 0x928   : > { %v1881_v55 = vadd.f32 1e-30, %v1676_v52 }
 0x929   : > { %v1880_v54 = vadd.f32 1e-30, %v1675_v51 }
 0x92d   : > { %v1673_v37 = vpop.xlane.xlu0 %1672 }
 0x92e   : > { %v1677_v57 = vadd.f32 %v1673_v37, %v1661_v56 }
 0x930   : > { %v1882_v0 = vadd.f32 1e-30, %v1677_v57  ;;  %v2006_v57 = vstv %s1092_s1  ;;  %s4291_s1 = sld [smem:[#allocation42_spill]] }
 0x931   : > { %v1664_v41 = vpop.xlane.xlu0 %1663 }
 0x932   : > { %v1674_v44 = vadd.f32 %v1664_v41, %v1658_v42 }
 0x934   : > { %v1879_v47 = vadd.f32 1e-30, %v1674_v44 }
 0x936   : > { %3144 = vrcp.f32 %v1879_v47 }
 0x937   : > { %3146 = vrcp.f32 %v1880_v54  ;;  %v2734_v54 = vld [vmem:[%s4279_s16] ss:$0 sm:$0xff]  ;;  %s4287_s16 = sld [smem:[#allocation38_spill]] }
 0x938   : > { %3148 = vrcp.f32 %v1881_v55  ;;  %v1094_v55 = vshrl.u32 %v1093_v22, 7 }
 0x939   : > { %3150 = vrcp.f32 %v1882_v0  ;;  %v2736_v0 = vld [vmem:[%s4281_s23] ss:$0 sm:$0xff]  ;;  %s4289_s23 = sld [smem:[#allocation37_spill]] }
 0x93a   : > { %vm4077_vm8 = vcmp.lt.s32.totalorder %v1094_v55, %v2006_v57  ;;  %vm2099_vm9 = vcmp.ge.s32.totalorder %v1094_v55, 1  ;;  %vm2118_vm10 = vcmp.lt.s32.totalorder %v1094_v55, 7 }
 0x940   : > { %v3145_v62 = vpop.eup %3144 }
 0x941   : > { %v3147_v10 = vpop.eup %3146 }
 0x942   : > { %v3149_v14 = vpop.eup %3148 }
 0x943   : > { %v3151_v24 = vpop.eup %3150 }
 0x968   : > { %v1725_v58 = vpop.f32.mrb[12].mxu0 }
 0x969   : > { %v1875_v60 = vadd.f32 %v1725_v58, %v1658_v42  ;;  %v2876_v61 = vpop.f32.mrb[13].mxu0  ;;  %v2735_v58 = vld [vmem:[%s4280_s18] ss:$0 sm:$0xff]  ;;  %s4288_s18 = sld [smem:[#allocation36_spill]] }
 0x96a   : > { %v1728_v63 = vpop.f32.mrb[14].mxu0 }
 0x96b   : > { %v1887_v1 = vmul.f32 %v3145_v62, %v1875_v60  ;;  %v2877_v2 = vpop.f32.mrb[15].mxu0  ;;  %v3115_v60 = vld [vmem:[%s4291_s1 + $0x8] sm:$0xff]  }
 0x96d   : > { %v1773_v5 = vpop.f32.mrb[16].mxu1 }
 0x96e   : > { %v1876_v6 = vadd.f32 %v1773_v5, %v1659_v49  ;;  %v2882_v7 = vpop.f32.mrb[17].mxu1  ;;  %v3111_v49 = vld [vmem:[%s4278_s27 + $0x8] sm:$0xff]  }
 0x96f   : > { %v1776_v11 = vpop.f32.mrb[18].mxu1 }
 0x970   : > { %v1821_v9 = vpop.f32.mrb[16].mxu0  ;;  %v1888_v15 = vmul.f32 %v3147_v10, %v1876_v6  ;;  %v2883_v16 = vpop.f32.mrb[19].mxu1 }
 0x971   : > { %v1877_v12 = vadd.f32 %v1821_v9, %v1660_v50  ;;  %v2888_v13 = vpop.f32.mrb[17].mxu0 }
 0x972   : > { %v1824_v17 = vpop.f32.mrb[18].mxu0  ;;  %1892 = vrot.lane.b32.xlu0 %v1888_v15, %s3540_s11  ;;  %s4284_s11 = sld [smem:[#allocation34_spill]] }
 0x973   : > { %v1889_v18 = vmul.f32 %v3149_v14, %v1877_v12  ;;  %v2889_v19 = vpop.f32.mrb[19].mxu0 }
 0x975   : > { %1896 = vrot.lane.b32.xlu1 %v1889_v18, %s3541_s10  ;;  %v1869_v20 = vpop.f32.mrb[20].mxu1 }
 0x976   : > { %v1878_v21 = vadd.f32 %v1869_v20, %v1661_v56  ;;  %v2894_v23 = vpop.f32.mrb[21].mxu1 }
 0x977   : > { %v1872_v26 = vpop.f32.mrb[22].mxu1 }
 0x978   : > { %v1890_v27 = vmul.f32 %v3151_v24, %v1878_v21  ;;  %v2895_v28 = vpop.f32.mrb[23].mxu1  ;;  %s4285_s10 = smov %s4284_s11  ;;  %v2742_v13 = vld [vmem:[%s4284_s11] ss:$0 sm:$0xff]  ;;  %s4292_s11 = sld [smem:[#allocation40_spill]] }
 0x979   : > { %v2743_v16 = vld [vmem:[%s4285_s10 + $0x1] ss:$0 sm:$0xff]  ;;  %v2744_v20 = vld [vmem:[%s4285_s10 + $0x2] ss:$0 sm:$0xff] }
 0x97a   : > { %1900 = vrot.lane.b32.xlu1 %v1890_v27, %s3542_s4  ;;  %s4286_s4 = sld [smem:[#allocation35_spill]] }
 0x980   : > { %v2741_v18 = vld [vmem:[%s4286_s4] ss:$0 sm:$0xff]  ;;  %s4293_s4 = sld [smem:[#allocation41_spill]] }
 0x9e4   : > { %v1893_v30 = vpop.permute.xlu0 %1892 }
 0x9e5   : > { %v1903_v31 = vsel %vm1413_vm3, %v1887_v1, %v1893_v30 }
 0x9e7   : > { %v1897_v29 = vpop.permute.xlu1 %1896 }
 0x9e8   : > { %v1905_v32 = vsel %vm1904_vm6, %v1903_v31, %v1897_v29 }
 0x9ec   : > { %v1901_v25 = vpop.permute.xlu1 %1900 }
 0x9ed   : > { %v1907_v33 = vsel %vm1906_vm7, %v1905_v32, %v1901_v25 }
 0x9ee   : > { %v1912_v34 = vpack.c.bf16 %v1907_v33, %v1907_v33 }
 0x9f0   : > { %2901 = vmatmul.mubr.msk.bf16.vlgmr.msra.gmra.mrb[20].mxu0 %vm1097_vm0, %v1912_v34  ;;  %v3112_v34 = vld [vmem:[%s4287_s16] sm:$0xff]  }
 0x9f1   : > { %2916 = vmatprep.mubr.msk.bf16.mxu0 %vm3534_vm1, %v3533_v8  ;;  %2913 = vmatpush3.bf16.msra.mxu0 %v3112_v34 }
 0x9f2   : > { %2914 = vmatprep.subr.bf16.mxu0 %v3533_v8 }
 0xac3   : > { %v1962_v35 = vpop.f32.mrb[20].mxu0 }
 0xac4   : > { %v1968_v37 = vadd.f32 %v1962_v35, %v3931_v43  ;;  %v2902_v38 = vpop.f32.mrb[21].mxu0  ;;  %v3110_v43 = vld [vmem:[%s4278_s27] sm:$0xff]   ;;  %v3113_v35 = vld [vmem:[%s4287_s16 + $0x8] sm:$0xff]  }
 0xac5   : > { %v1965_v39 = vpop.f32.mrb[22].mxu0  ;;  %2905 = vmatpush3.bf16.msra.mxu1 %v3110_v43  ;;  %2915 = vmatpush3.bf16.msra.mxu0 %v3113_v35 }
 0xac6   : > { %v4063_v40 = vadd.f32 %v2733_v36, %v1968_v37  ;;  %v2903_v41 = vpop.f32.mrb[23].mxu0  ;;  %2906 = vmatprep.subr.bf16.mxu1 %v3533_v8  ;;  %2928 = vmatprep.subr.bf16.mxu0 %v3533_v8 }
 0xac7   : > { %v2745_v41 = vld [vmem:[%s4288_s18] ss:$0 sm:$0xff]  ;;  %s4294_s18 = sld [smem:[#allocation44_spill]] }
 0xac8   : > { %v1979_v42 = vsel %vm1097_vm0, %v4063_v40, 0.0 }
 0xac9   : > { %1980 = vadd.xlane.f32.xlu1 %v1979_v42  ;;  %2907 = vmatpush3.bf16.msra.mxu1 %v3111_v49 }
 0xaca   : > { %2920 = vmatprep.subr.bf16.mxu1 %v3533_v8 }
 0xb56   : > { %v1981_v44 = vpop.xlane.xlu1 %1980 }
 0xb57   : > { %v1982_v45 = vmul.f32 0.03125, %v1981_v44  ;;  %v2746_v44 = vld [vmem:[%s4289_s23] ss:$0 sm:$0xff]  ;;  %s4295_s23 = sld [smem:[#allocation43_spill]] }
 0xb59   : > { %v1983_v46 = vsub.f32 %v4063_v40, %v1982_v45 }
 0xb5b   : > { %v1984_v47 = vmul.f32 %v1983_v46, %v1983_v46 }
 0xb5d   : > { %v1985_v48 = vsel %vm1097_vm0, %v1984_v47, 0.0 }
 0xb5e   : > { %1986 = vadd.xlane.f32.xlu0 %v1985_v48 }
 0xbeb   : > { %v1987_v50 = vpop.xlane.xlu0 %1986 }
 0xbec   : > { %v1988_v51 = vmul.f32 0.03125, %v1987_v50 }
 0xbee   : > { %v1989_v52 = vadd.f32 1e-12, %v1988_v51 }
 0xbf0   : > { %3152 = vrsqrt.f32 %v1989_v52  ;;  %v2748_v52 = vld [vmem:[%s4290_s25] ss:$0 sm:$0xff]  ;;  %s4296_s25 = sld [smem:[#allocation45_spill]] }
 0xbfa   : > { %v3153_v53 = vpop.eup %3152 }
 0xbfb   : > { %v1991_v56 = vmul.f32 %v3153_v53, %v1983_v46 }
 0xbfd   : > { %v1998_v59 = vmul.f32 %v2734_v54, %v1991_v56 }
 0xbff   : > { %v2005_v61 = vadd.f32 %v2735_v58, %v1998_v59 }
 0xc01   : > { %v2008_v62 = vsel %vm4077_vm8, %v2005_v61, 0.0 }
 0xc02   : > { %v2013_v63 = vpack.c.bf16 %v2008_v62, %v2008_v62 }
 0xc04   : > { %2909 = vmatmul.mubr.msk.bf16.vlgmr.msra.gmra.mrb[24].mxu1 %vm1097_vm0, %v2013_v63 }
 0xc05   : > { %2924 = vmatprep.mubr.msk.bf16.mxu1 %vm3534_vm1, %v3533_v8 }
 0xcd7   : > { %v2070_v22 = vpop.f32.mrb[24].mxu1 }
 0xcd8   : > { %v2071_v1 = vadd.f32 %v2736_v0, %v2070_v22  ;;  %v2910_v2 = vpop.f32.mrb[25].mxu1 }
 0xcd9   : > { %v2073_v4 = vpop.f32.mrb[26].mxu1  ;;  %v3114_v2 = vld [vmem:[%s4291_s1] sm:$0xff]  }
 0xcda   : > { %v2740_v5 = vmul.f32 -1.442695, %v2071_v1  ;;  %v2911_v6 = vpop.f32.mrb[27].mxu1  ;;  %2921 = vmatpush3.bf16.msra.mxu1 %v3114_v2 }
 0xcdb   : > { %2922 = vmatprep.subr.bf16.mxu1 %v3533_v8 }
 0xcdc   : > { %3154 = vpow2.f32 %v2740_v5 }
 0xcde   : > { %2923 = vmatpush3.bf16.msra.mxu1 %v3115_v60 }
 0xce6   : > { %v3155_v7 = vpop.eup %3154 }
 0xce7   : > { %v2079_v9 = vadd.f32 1.0, %v3155_v7  ;;  %v2752_v7 = vld [vmem:[%s4292_s11] ss:$0 sm:$0xff]  ;;  %s4131_s11 = sand.u32 1, %s3482_s22  }
 0xce9   : > { %3156 = vrcp.f32 %v2079_v9 }
 0xcf3   : > { %v3157_v10 = vpop.eup %3156 }
 0xcf4   : > { %2083 = vrot.lane.b32.xlu0 %v3157_v10, %s3538_s26  ;;  %v2753_v10 = vld [vmem:[%s4293_s4] ss:$0 sm:$0xff]  ;;  %s4228_s4 = sshll.u32 %s4131_s11, 3 }
 0xd66   : > { %v2084_v11 = vpop.permute.xlu0 %2083 }
 0xd67   : > { %v2086_v12 = vmul.f32 %v2084_v11, %v2071_v1 }
 0xd69   : > { %v2098_v14 = vrot.slane %v2086_v12, 7  ;;  %v2117_v15 = vrot.slane %v2086_v12, 1  ;;  %v2115_v23 = vmul.f32 %v2743_v16, %v2086_v12  ;;  %v3118_v16 = vld [vmem:[%s4294_s18 + $0x10] sm:$0xff]  }
 0xd6b   : > { %v2100_v17 = vsel %vm2099_vm9, %v2098_v14, 0.0  ;;  %v2119_v21 = vsel %vm2118_vm10, %v2117_v15, 0.0  ;;  %v3116_v14 = vld [vmem:[%s4294_s18] sm:$0xff]   ;;  %v3117_v15 = vld [vmem:[%s4294_s18 + $0x8] sm:$0xff]  }
 0xd6c   : > { %v2107_v19 = vmul.f32 %v2742_v13, %v2100_v17  ;;  %v2126_v27 = vmul.f32 %v2744_v20, %v2119_v21  ;;  %v3119_v17 = vld [vmem:[%s4294_s18 + $0x18] sm:$0xff]  }
 0xd6e   : > { %v2108_v24 = vadd.f32 %v2741_v18, %v2107_v19  ;;  %v2754_v18 = vld [vmem:[%s4295_s23] ss:$0 sm:$0xff]  ;;  %s1082_s23 = scalar_lea.vmem [#allocation17], %s4228_s4  ;;  %s3543_s4 = smov [#allocation17]  }
 0xd6f   : > { %s3382_s3 = sshll.u32 %s3543_s4, 4  ;;  %s3383_s3 = int_to_ptr.vmem [resolvable:$false] %s3382_s3 }
 0xd70   : > { %v2116_v26 = vadd.f32 %v2115_v23, %v2108_v24  ;;  %s3384_s6 = scalar_lea.vmem %s3383_s3, 256 }
 0xd72   : > { %v2127_v28 = vadd.f32 %v2126_v27, %v2116_v26 }
 0xd74   : > { %v2130_v29 = vsel %vm1097_vm0, %v2127_v28, 0.0 }
 0xd75   : > { %2131 = vadd.xlane.f32.xlu1 %v2130_v29 }
 0xe02   : > { %v2132_v30 = vpop.xlane.xlu1 %2131 }
 0xe03   : > { %v2133_v31 = vmul.f32 0.03125, %v2132_v30 }
 0xe05   : > { %v2134_v32 = vsub.f32 %v2127_v28, %v2133_v31 }
 0xe07   : > { %v2135_v25 = vmul.f32 %v2134_v32, %v2134_v32 }
 0xe09   : > { %v2136_v33 = vsel %vm1097_vm0, %v2135_v25, 0.0 }
 0xe0a   : > { %2137 = vadd.xlane.f32.xlu1 %v2136_v33 }
 0xe97   : > { %v2138_v36 = vpop.xlane.xlu1 %2137 }
 0xe98   : > { %v2139_v37 = vmul.f32 0.03125, %v2138_v36 }
 0xe9a   : > { %v2140_v38 = vadd.f32 1e-05, %v2139_v37 }
 0xe9c   : > { %3158 = vrsqrt.f32 %v2140_v38 }
 0xea6   : > { %v3159_v39 = vpop.eup %3158 }
 0xea7   : > { %v2142_v42 = vmul.f32 %v3159_v39, %v2134_v32 }
 0xea9   : > { %v2149_v45 = vmul.f32 %v2745_v41, %v2142_v42 }
 0xeab   : > { %v2156_v46 = vadd.f32 %v2746_v44, %v2149_v45 }
 0xead   : > { %v2747_v47 = vmul.f32 -1.442695, %v2156_v46 }
 0xeaf   : > { %3160 = vpow2.f32 %v2747_v47 }
 0xeb9   : > { %v3161_v48 = vpop.eup %3160 }
 0xeba   : > { %v2160_v43 = vadd.f32 1.0, %v3161_v48 }
 0xebc   : > { %3162 = vrcp.f32 %v2160_v43 }
 0xec6   : > { %v3163_v49 = vpop.eup %3162 }
 0xec7   : > { %v2163_v50 = vmul.f32 %v3163_v49, %v2156_v46 }
 0xec9   : > { %v2168_v51 = vpack.c.bf16 %v2163_v50, %v2163_v50 }
 0xecb   : > { %2917 = vmatmul.mubr.msk.bf16.vlgmr.msra.gmra.mrb[24].mxu0 %vm1097_vm0, %v2168_v51 }
 0xecc   : > { %2936 = vmatprep.mubr.msk.bf16.mxu0 %vm3534_vm1, %v3533_v8  ;;  %2929 = vmatpush3.bf16.msra.mxu0 %v3116_v14 }
 0xecd   : > { %2930 = vmatprep.subr.bf16.mxu0 %v3533_v8 }
 0xed0   : > { %2931 = vmatpush3.bf16.msra.mxu0 %v3117_v15 }
 0xed1   : > { %2932 = vmatprep.subr.bf16.mxu0 %v3533_v8 }
 0xed4   : > { %2933 = vmatpush3.bf16.msra.mxu0 %v3118_v16 }
 0xed5   : > { %2934 = vmatprep.subr.bf16.mxu0 %v3533_v8  ;;  %v2759_v8 = vld [vmem:[%s4296_s25] ss:$0 sm:$0xff]  ;;  %s4141_s25 = scalar_lea.hbm %s4253_s7, %s3984_s8 }
 0xed8   : > { %2935 = vmatpush3.bf16.msra.mxu0 %v3119_v17 }
 0xf9e   : > { %v2225_v53 = vpop.f32.mrb[24].mxu0 }
 0xf9f   : > { %v2226_v54 = vadd.f32 %v2748_v52, %v2225_v53  ;;  %v2918_v55 = vpop.f32.mrb[25].mxu0 }
 0xfa0   : > { %v2228_v56 = vpop.f32.mrb[26].mxu0 }
 0xfa1   : > { %v2231_v57 = vsel %vm4077_vm8, %v2226_v54, 0.0  ;;  %v2919_v58 = vpop.f32.mrb[27].mxu0 }
 0xfa2   : > { %v2232_v59 = vadd.f32 %v2231_v57, %v4063_v40 }
 0xfa4   : > { %v2235_v61 = vsel %vm1097_vm0, %v2232_v59, 0.0 }
 0xfa5   : > { %2236 = vadd.xlane.f32.xlu1 %v2235_v61 }
0x1032   : > { %v2237_v62 = vpop.xlane.xlu1 %2236 }
0x1033   : > { %v2238_v63 = vmul.f32 0.03125, %v2237_v62 }
0x1035   : > { %v2239_v0 = vsub.f32 %v2232_v59, %v2238_v63 }
0x1037   : > { %v2240_v22 = vmul.f32 %v2239_v0, %v2239_v0 }
0x1039   : > { %v2241_v1 = vsel %vm1097_vm0, %v2240_v22, 0.0 }
0x103a   : > { %2242 = vadd.xlane.f32.xlu1 %v2241_v1 }
0x10c7   : > { %v2243_v40 = vpop.xlane.xlu1 %2242 }
0x10c8   : > { %v2244_v4 = vmul.f32 0.03125, %v2243_v40 }
0x10ca   : > { %v2245_v5 = vadd.f32 1e-12, %v2244_v4 }
0x10cc   : > { %3164 = vrsqrt.f32 %v2245_v5 }
0x10d6   : > { %v3165_v6 = vpop.eup %3164 }
0x10d7   : > { %v2247_v9 = vmul.f32 %v3165_v6, %v2239_v0 }
0x10d9   : > { %v2254_v11 = vmul.f32 %v2752_v7, %v2247_v9 }
0x10db   : > { %v2261_v12 = vadd.f32 %v2753_v10, %v2254_v11 }
0x10dd   : > { %v2266_v13 = vpack.c.bf16 %v2261_v12, %v2261_v12 }
0x10df   : > { %2925 = vmatmul.mubr.msk.bf16.vlgmr.msra.gmra.mrb[28].mxu1 %vm1097_vm0, %v2266_v13 }
0x11b2   : > { %v2323_v19 = vpop.f32.mrb[28].mxu1 }
0x11b3   : > { %v2324_v20 = vadd.f32 %v2754_v18, %v2323_v19  ;;  %v2926_v21 = vpop.f32.mrb[29].mxu1 }
0x11b4   : > { %v2326_v23 = vpop.f32.mrb[30].mxu1 }
0x11b5   : > { %v2758_v24 = vmul.f32 -1.442695, %v2324_v20  ;;  %v2927_v26 = vpop.f32.mrb[31].mxu1 }
0x11b7   : > { %3166 = vpow2.f32 %v2758_v24 }
0x11c1   : > { %v3167_v27 = vpop.eup %3166 }
0x11c2   : > { %v2332_v28 = vadd.f32 1.0, %v3167_v27 }
0x11c4   : > { %3168 = vrcp.f32 %v2332_v28 }
0x11ce   : > { %v3169_v29 = vpop.eup %3168 }
0x11cf   : > { %v2335_v30 = vmul.f32 %v3169_v29, %v2324_v20 }
0x11d1   : > { %v2344_v31 = vpack.c.bf16 %v2335_v30, %v2335_v30 }
0x11d3   : > { %2937 = vmatmul.mubr.msk.bf16.vlgmr.msra.gmra.mrb[28].mxu0 %vm1240_vm2, %v2344_v31 }
0x12a6   : > { %v2413_v32 = vpop.f32.mrb[28].mxu0 }
0x12a7   : > { %v2414_v25 = vadd.f32 %v2759_v8, %v2413_v32  ;;  %v2938_v33 = vpop.f32.mrb[29].mxu0 }
0x12a8   : > { %v2416_v34 = vpop.f32.mrb[30].mxu0 }
0x12a9   : > { %v2419_v35 = vmul.f32 0.5, %v2414_v25  ;;  %v2939_v36 = vpop.f32.mrb[31].mxu0 }
0x12ab   : > { %v2420_v37 = vadd.f32 %v2419_v35, %v2232_v59 }
0x12ad   : > { %v2423_v38 = vsel %vm1097_vm0, %v2420_v37, 0.0 }
0x12ae   : > { %2424 = vadd.xlane.f32.xlu1 %v2423_v38 }
0x12bf   : > { %1388 = vrot.lane.b32.xlu1 %v3944_v3, %s3538_s26  ;;  %s2483_s26 = sshll.u32 %s1082_s23, 4  ;;  %s4137_s26 = int_to_ptr.vmem [resolvable:$true] %s2483_s26 }
0x12c0   : > { %s3378_s1 = scalar_lea.vmem %s4137_s26, 128  ;;  %p3385_p2 = scmp.lt.s32.totalorder %s4137_s26, %s3383_s3 }
0x12c1   : > { %p3379_p13 = scmp.ne.s32.totalorder %s4137_s26, %s3378_s1  ;;  %p3386_p4 = scmp.lt.s32.totalorder %s3384_s6, %s3378_s1 }
0x12c3   : > { %1393 = vrot.lane.b32.xlu1 %v3944_v3, %s4226_s5  ;;  %s2457_s5 = scalar_lea.sflag [#allocation18], %s4131_s11  ;;  %p3380_p11 = pnand %p3379_p13, %p4297_p10 }
0x12c4   : > { %p3387_p5 = por %p3386_p4, %p3385_p2 }
0x12c5   : > { %p3381_p0 = pneg %p3380_p11 }
0x12c7   : > { %p3388_p3 = pnand %p3387_p5, %p3381_p0 }
0x133b   : > { %v2425_v39 = vpop.xlane.xlu1 %2424 }
0x133c   : > { %v2426_v41 = vmul.f32 0.03125, %v2425_v39 }
0x133e   : > { %v2427_v42 = vsub.f32 %v2420_v37, %v2426_v41 }
0x133f   : > { %v1389_v44 = vpop.permute.xlu1 %1388 }
0x1340   : > { %1392 = vst.msk [vmem:[%s1082_s23] sm:$0xf] %vm1391_vm11, %v1389_v44  ;;  %v2428_v45 = vmul.f32 %v2427_v42, %v2427_v42 }
0x1342   : > { %v2429_v3 = vsel %vm1097_vm0, %v2428_v45, 0.0 }
0x1343   : > { %2430 = vadd.xlane.f32.xlu0 %v2429_v3  ;;  %v1394_v46 = vpop.permute.xlu1 %1393 }
0x1344   : > { %2721 = vst.msk [vmem:[%s1082_s23 + $0x4] sm:$0xf] %vm1391_vm11, %v1394_v46 }
0x1345   : > { %3391 = shalt.err (!%p3388_p3)
}
0x1346   : > { %s3392_s23 = scalar_lea.hbm %s4141_s25, 128  ;;  %s3396_s4 = scalar_lea.hbm %s4253_s7, 256 }
0x1347   : > { %p3393_p6 = scmp.ne.s32.totalorder %s4141_s25, %s3392_s23  ;;  %p3397_p8 = scmp.lt.u32.totalorder %s4141_s25, %s4253_s7 }
0x1348   : > { %p3398_p9 = scmp.lt.u32.totalorder %s3396_s4, %s3392_s23  ;;  %p3400_p13 = scmp.lt.u32.totalorder %s3392_s23, %s4141_s25 }
0x1349   : > { %p3394_p7 = pnand %p3393_p6, %p4297_p10 }
0x134a   : > { %p3399_p12 = por %p3398_p9, %p3397_p8 }
0x134b   : > { %p3395_p1 = pneg %p3394_p7 }
0x134c   : > { %p3401_p11 = por %p3400_p13, %p3399_p12 }
0x134e   : > { %p3402_p0 = pnand %p3401_p11, %p3395_p1 }
0x1350   : > { %3405 = shalt.err (!%p3402_p0)
}
0x1351   : > { %s3544_s3 = smov 4   ;;  %s4298_s6 = smov 64   ;;  %v2765_v50 = vld [vmem:[%s3704_s20] ss:$0 sm:$0xff] }
0x1352   : > { %2969 = dma.vmem_to_hbm [thread:$0]  (%p4297_p10), %s4137_s26, 128, %s4141_s25, %s2457_s5, %s4298_s6, %s4298_s6, %s3544_s3  }
0x1353   : > { %v2766_v52 = vld [vmem:[%s3709_s12] ss:$0 sm:$0xff]  ;;  %s4299_s1 = sshll.u32 %s4131_s11, 3  ;;  %s4171_s7 = scalar_lea.hbm %s3714_s28, %s3984_s8 }
0x1354   : > { %s1075_s23 = scalar_lea.vmem [#allocation16], %s4299_s1  ;;  %s2452_s5 = scalar_lea.sflag [#allocation6], %s4131_s11 }
0x1355   : > { %s2470_s4 = sshll.u32 %s1075_s23, 4  ;;  %s3545_s25 = smov [#allocation16]   ;;  %s4173_s4 = int_to_ptr.vmem [resolvable:$true] %s2470_s4 }
0x1356   : > { %s3406_s26 = scalar_lea.vmem %s4173_s4, 128  ;;  %s3410_s3 = sshll.u32 %s3545_s25, 4  ;;  %s3411_s3 = int_to_ptr.vmem [resolvable:$false] %s3410_s3 }
0x1357   : > { %p3407_p2 = scmp.ne.s32.totalorder %s4173_s4, %s3406_s26  ;;  %s3412_s6 = scalar_lea.vmem %s3411_s3, 256 }
0x1358   : > { %p3413_p3 = scmp.lt.s32.totalorder %s4173_s4, %s3411_s3  ;;  %p3414_p6 = scmp.lt.s32.totalorder %s3412_s6, %s3406_s26 }
0x1359   : > { %p3408_p4 = pnand %p3407_p2, %p4297_p10 }
0x135a   : > { %p3415_p7 = por %p3414_p6, %p3413_p3 }
0x135b   : > { %p3409_p5 = pneg %p3408_p4 }
0x135d   : > { %p3416_p1 = pnand %p3415_p7, %p3409_p5 }
0x13d0   : > { %v2431_v47 = vpop.xlane.xlu0 %2430 }
0x13d1   : > { %v2432_v48 = vmul.f32 0.03125, %v2431_v47 }
0x13d3   : > { %v2433_v43 = vadd.f32 1e-12, %v2432_v48 }
0x13d5   : > { %3170 = vrsqrt.f32 %v2433_v43 }
0x13df   : > { %v3171_v49 = vpop.eup %3170 }
0x13e0   : > { %v2435_v51 = vmul.f32 %v3171_v49, %v2427_v42 }
0x13e2   : > { %v2442_v53 = vmul.f32 %v2765_v50, %v2435_v51 }
0x13e4   : > { %v2449_v54 = vadd.f32 %v2766_v52, %v2442_v53 }
0x13e6   : > { %2450 = vst.msk [vmem:[%s1075_s23] sm:$0xff] %vm1097_vm0, %v2449_v54 }
0x13e7   : > { %3419 = shalt.err (!%p3416_p1)
}
0x13e8   : > { %s3420_s8 = scalar_lea.hbm %s4171_s7, 128  ;;  %s3424_s11 = scalar_lea.hbm %s3714_s28, 256 }
0x13e9   : > { %p3421_p8 = scmp.ne.s32.totalorder %s4171_s7, %s3420_s8  ;;  %p3425_p13 = scmp.lt.u32.totalorder %s4171_s7, %s3714_s28 }
0x13ea   : > { %p3426_p11 = scmp.lt.u32.totalorder %s3424_s11, %s3420_s8  ;;  %p3428_p2 = scmp.lt.u32.totalorder %s3420_s8, %s4171_s7 }
0x13eb   : > { %p3422_p9 = pnand %p3421_p8, %p4297_p10 }
0x13ec   : > { %p3427_p0 = por %p3426_p11, %p3425_p13 }
0x13ed   : > { %p3423_p12 = pneg %p3422_p9 }
0x13ee   : > { %p3429_p4 = por %p3428_p2, %p3427_p0 }
0x13f0   : > { %p3430_p5 = pnand %p3429_p4, %p3423_p12 }
0x13f2   : > { %3433 = shalt.err (!%p3430_p5)
}
0x13f3   : > { %2968 = dma.vmem_to_hbm [thread:$0]  (%p4297_p10), %s4173_s4, 128, %s4171_s7, %s2452_s5  }
0x13f4 PF: > { %s4300_s1 = sld [smem:[#allocation50_spill]]  ;;  %p3015_p3 = scmp.ge.s32.totalorder %s3490_s15, 2 }
0x13f5   : > { %s2498_s23 = sand.u32 1, %s3478_s0  }
0x13f6   : > { %s2499_s26 = scalar_lea.sflag [#allocation6], %s2498_s23 }
0x13fa   : > { %p4301_p6 = scmp.ne.s32.totalorder %s4300_s1, 0 }
0x13fc   : > { %p2995_p7 = pnand %p3015_p3, %p4301_p6 }
0x13fe   : > { %3469 = dma.done.wait (!%p2995_p7), %s2499_s26, 128  }
0x13ff   : > { %3471 = vsyncadd (!%p2995_p7), %s2499_s26, 4294967168  ;;  %s2508_s25 = scalar_lea.sflag [#allocation18], %s2498_s23 }
0x1400   : > { %3473 = dma.done.wait (!%p2995_p7), %s2508_s25, 128  }
0x1401   : > { %3475 = vsyncadd (!%p2995_p7), %s2508_s25, 4294967168  ;;  %s4302_s15 = sld [smem:[#allocation48_spill]]  ;;  %s4303_s2 = sld [smem:[#allocation47_spill]] }
0x1402   : > { %s4304_s11 = sld [smem:[#allocation49_spill]]  ;;  %s4305_s0 = smov %s3482_s22 }
0x1407   : > { %p89_p10 = scmp.ge.s32.totalorder %s4302_s15, 4   ;;  %s4306_s22 = smov %s4303_s2 }
0x1409   :  { %91 = sbr.rel (!%p89_p10) target bundleno = 81 (0x51), region = 259 }
0x1410   :  { %2513 = vsyncpa [#allocation5], 1 }
0x1411   :  { %2515 = vsyncpa [#allocation5 + $0x1], 1 }
0x1412   :  { %2516 = vsyncpa [#allocation8], 1 }
0x1413   :  { %2517 = vsyncpa [#allocation11], 1 }
0x1414   :  { %2518 = vsyncpa [#allocation14], 1 }
0x1415   :  { %2519 = vsyncpa [#allocation6], 1 }
0x1416   :  { %2521 = vsyncpa [#allocation6 + $0x1], 1 }
0x1417   :  { %2522 = vsyncpa [#allocation18], 1 }
0x1418   :  { %2524 = vsyncpa [#allocation18 + $0x1], 1 }

</bundles_post_ra>
